<compile_context>
chip_gen: v6e
topology: v6e:2x2x1
jax: 0.10.0
libtpu: 0.0.40
codegen_flags: <defaults>
</compile_context>

<pallas_src>
import functools

import jax
import jax.numpy as jnp
from jax import lax
from jax.experimental import pallas as pl
from jax.experimental.pallas import tpu as pltpu


def _round_up(x, m):
    return (x + m - 1) // m * m


# ----------------------------------------------------------------------------
# Fused kernel: pre-linear -> n_layers GIN layers (edge-list aggregation)
#               -> per-layer global_add_pool -> incremental post MLP.
# ----------------------------------------------------------------------------
def _fused_embed_kernel(src_ref, dst_ref,                       # SMEM (scalar prefetch)
                        x_ref, batch_ref,
                        pre_w_ref, pre_b_ref,
                        w1_ref, b1_ref, w2_ref, b2_ref,
                        post_w1_ref, post_b1_ref, post_w2_ref, post_b2_ref,
                        o_ref,
                        h_scr, agg_scr,
                        *, n_layers, n_edges, n_graphs_pad):
    f32 = jnp.float32

    # pre linear (no ReLU -- matches reference)
    h = jnp.dot(x_ref[...], pre_w_ref[...],
                preferred_element_type=f32) + pre_b_ref[...]
    xres = h

    # pooling matrix built on-chip from node->graph ids (padded nodes carry an
    # out-of-range id, so their column is all-zero).
    batch_ids = batch_ref[...]                                   # (1, N) int32
    n_pad = batch_ids.shape[1]
    graph_iota = lax.broadcasted_iota(jnp.int32, (n_graphs_pad, n_pad), 0)
    p = (batch_ids == graph_iota).astype(f32)                    # (B, N)

    # incremental post-MLP first layer: hid = sum_l pool(h_l) @ post_w1[l] + b1
    pooled = jnp.dot(p, h, preferred_element_type=f32)
    hid = jnp.dot(pooled, post_w1_ref[0],
                  preferred_element_type=f32) + post_b1_ref[...]

    for l in range(n_layers):
        # GIN aggregation (eps=0): agg[i] = h[i] + sum_{(s -> i) in E} h[s]
        # Edge-list segment-sum in VMEM; no dense (N,N) adjacency anywhere.
        h_scr[...] = h
        agg_scr[...] = h

        def edge_body(e, carry):
            s = src_ref[e]
            d = dst_ref[e]
            agg_scr[pl.ds(d, 1), :] = (agg_scr[pl.ds(d, 1), :]
                                       + h_scr[pl.ds(s, 1), :])
            return carry

        lax.fori_loop(0, n_edges, edge_body, 0)
        agg = agg_scr[...]

        # GINConv nn: Linear -> ReLU -> Linear
        m = jnp.maximum(jnp.dot(agg, w1_ref[l],
                                preferred_element_type=f32) + b1_ref[l], 0.0)
        y = jnp.dot(m, w2_ref[l], preferred_element_type=f32) + b2_ref[l]
        if l & 1:
            y = y + xres
            xres = y
        h = jnp.maximum(y, 0.0)

        pooled = jnp.dot(p, h, preferred_element_type=f32)
        hid = hid + jnp.dot(pooled, post_w1_ref[l + 1],
                            preferred_element_type=f32)

    hid = jnp.maximum(hid, 0.0)
    o_ref[...] = (jnp.dot(hid, post_w2_ref[...], preferred_element_type=f32)
                  + post_b2_ref[...])


# ----------------------------------------------------------------------------
# One-time parameter padding / stacking (hoisted out of the forward).
# Zero padding keeps padded lanes exactly 0, so results match unpadded math.
# ----------------------------------------------------------------------------
def prepare_params(params, n_layers, hidden_dim, output_dim, input_dim):
    f32 = jnp.float32
    D = _round_up(hidden_dim, 128)
    OUT = _round_up(output_dim, 128)

    def pad2(w, r, c):
        return jnp.zeros((r, c), f32).at[:w.shape[0], :w.shape[1]].set(
            w.astype(f32))

    return {
        # x keeps its real feature width; only the output side of pre is padded.
        "pre_w": pad2(params["pre_w"], input_dim, D),
        "pre_b": pad2(params["pre_b"], 1, D),
        "w1": jnp.stack([pad2(params["convs"][l][0], D, D) for l in range(n_layers)]),
        "b1": jnp.stack([pad2(params["convs"][l][1], 1, D) for l in range(n_layers)]),
        "w2": jnp.stack([pad2(params["convs"][l][2], D, D) for l in range(n_layers)]),
        "b2": jnp.stack([pad2(params["convs"][l][3], 1, D) for l in range(n_layers)]),
        # post_w1 re-chunked per layer: (L+1, D, D)
        "post_w1": jnp.stack([
            pad2(params["post_w1"][l * hidden_dim:(l + 1) * hidden_dim, :], D, D)
            for l in range(n_layers + 1)]),
        "post_b1": pad2(params["post_b1"], 1, D),
        "post_w2": pad2(params["post_w2"], D, OUT),
        "post_b2": pad2(params["post_b2"], 1, OUT),
    }


# ----------------------------------------------------------------------------
# EmbedModel forward: single pallas_call.
# ----------------------------------------------------------------------------
def embed_model_forward(padded_params, x, src, dst, batch, *,
                        num_graphs, output_dim):
    f32 = jnp.float32
    n_nodes = x.shape[0]
    n_edges = src.shape[0]
    n_layers = padded_params["w1"].shape[0]
    D = padded_params["pre_w"].shape[1]
    OUT = padded_params["post_w2"].shape[1]

    N = _round_up(n_nodes, 8)           # sublane-align node rows
    B = _round_up(num_graphs, 8)        # sublane-align graph rows

    # Minimal per-call glue: zero-pad node rows; padded nodes get an
    # out-of-range graph id so they pool into nothing.  No scatter anywhere.
    x_pad = jnp.pad(x.astype(f32), ((0, N - n_nodes), (0, 0)))
    batch_pad = jnp.pad(batch.astype(jnp.int32), (0, N - n_nodes),
                        constant_values=B)[None, :]              # (1, N)
    src_i = src.astype(jnp.int32)
    dst_i = dst.astype(jnp.int32)

    operands = (x_pad, batch_pad,
                padded_params["pre_w"], padded_params["pre_b"],
                padded_params["w1"], padded_params["b1"],
                padded_params["w2"], padded_params["b2"],
                padded_params["post_w1"], padded_params["post_b1"],
                padded_params["post_w2"], padded_params["post_b2"])

    def full_spec(shape):
        # full-array block (block == array dims); index_map also receives the
        # scalar-prefetch refs as trailing args.
        return pl.BlockSpec(shape, lambda i, *prefetch: (0,) * len(shape))

    out_pad = pl.pallas_call(
        functools.partial(_fused_embed_kernel, n_layers=n_layers,
                          n_edges=n_edges, n_graphs_pad=B),
        out_shape=jax.ShapeDtypeStruct((B, OUT), f32),
        grid_spec=pltpu.PrefetchScalarGridSpec(
            num_scalar_prefetch=2,
            grid=(1,),
            in_specs=[full_spec(op.shape) for op in operands],
            out_specs=full_spec((B, OUT)),
            scratch_shapes=[pltpu.VMEM((N, D), f32),    # h
                            pltpu.VMEM((N, D), f32)]),  # agg
        compiler_params=pltpu.CompilerParams(
            dimension_semantics=("arbitrary",),
            vmem_limit_bytes=32 * 1024 * 1024),
    )(src_i, dst_i, *operands)

    return out_pad[:num_graphs, :output_dim]


embed_model_forward_jit = jax.jit(
    embed_model_forward, static_argnames=("num_graphs", "output_dim"))


# ----------------------------------------------------------------------------
# Pure-JAX reference (for correctness check of the Pallas path).
# ----------------------------------------------------------------------------
def embed_model_forward_ref(params, x, edge_index, batch, num_graphs):
    n_nodes = x.shape[0]
    src, dst = edge_index[0], edge_index[1]
    adj = jnp.zeros((n_nodes, n_nodes), jnp.float32).at[dst, src].add(1.0)
    a_plus = adj + jnp.eye(n_nodes, dtype=jnp.float32)
    pool_mat = (batch[None, :] == jnp.arange(num_graphs)[:, None]).astype(jnp.float32)

    h = x @ params["pre_w"] + params["pre_b"]
    emb = h
    xres = h
    for i, (w1, b1, w2, b2) in enumerate(params["convs"]):
        agg = a_plus @ h
        y = jnp.maximum(agg @ w1 + b1, 0.0) @ w2 + b2
        if i & 1:
            y = y + xres
            xres = y
        h = jnp.maximum(y, 0.0)
        emb = jnp.concatenate([emb, h], axis=1)
    pooled = pool_mat @ emb
    hid = jnp.maximum(pooled @ params["post_w1"] + params["post_b1"], 0.0)
    return hid @ params["post_w2"] + params["post_b2"]


# ----------------------------------------------------------------------------
# Deterministic parameter init (unpadded "real" sizes; padding via prepare_params).
# ----------------------------------------------------------------------------
def init_params(key, n_layers, hidden_dim, output_dim, input_dim):
    def lin(k, fan_in, fan_out):
        kw, kb = jax.random.split(k)
        scale = 1.0 / jnp.sqrt(fan_in)
        w = jax.random.uniform(kw, (fan_in, fan_out), jnp.float32, -scale, scale)
        b = jax.random.uniform(kb, (1, fan_out), jnp.float32, -scale, scale)
        return w, b

    keys = jax.random.split(key, 3 + 2 * n_layers)
    params = {}
    params["pre_w"], params["pre_b"] = lin(keys[0], input_dim, hidden_dim)
    convs = []
    for l in range(n_layers):
        w1, b1 = lin(keys[1 + 2 * l], hidden_dim, hidden_dim)
        w2, b2 = lin(keys[2 + 2 * l], hidden_dim, hidden_dim)
        convs.append((w1, b1, w2, b2))
    params["convs"] = convs
    params["post_w1"], params["post_b1"] = lin(keys[1 + 2 * n_layers],
                                               hidden_dim * (n_layers + 1), hidden_dim)
    params["post_w2"], params["post_b2"] = lin(keys[2 + 2 * n_layers],
                                               hidden_dim, output_dim)
    return params


if __name__ == "__main__":
    n_layers, hidden_dim, output_dim, input_dim = 3, 32, 16, 8
    n_nodes, n_edges, num_graphs = 16, 40, 2

    key = jax.random.PRNGKey(0)
    k_par, k_x, k_src, k_dst = jax.random.split(key, 4)

    params = init_params(k_par, n_layers, hidden_dim, output_dim, input_dim)
    padded_params = prepare_params(params, n_layers, hidden_dim,
                                   output_dim, input_dim)   # hoisted, once

    x = jax.random.normal(k_x, (n_nodes, input_dim), jnp.float32)
    src = jax.random.randint(k_src, (n_edges,), 0, n_nodes)
    dst = jax.random.randint(k_dst, (n_edges,), 0, n_nodes)
    edge_index = jnp.stack([src, dst], axis=0)               # (2, E)
    # two graphs: nodes [0..9] -> graph 0, [10..15] -> graph 1
    batch = jnp.concatenate([jnp.zeros(10, jnp.int32), jnp.ones(6, jnp.int32)])

    out = embed_model_forward_jit(padded_params, x, src, dst, batch,
                                  num_graphs=num_graphs, output_dim=output_dim)
    out = jax.block_until_ready(out)

    ref = embed_model_forward_ref(params, x, edge_index, batch, num_graphs)
    assert out.shape == (num_graphs, output_dim)
    assert jnp.allclose(out, ref, atol=1e-4, rtol=1e-4), "Pallas output mismatch"

    print("KERNEL_OK")
</pallas_src>

<mosaic_0001>
module attributes {stable_mosaic.version = 11 : i64} {
  func.func @_fused_embed_kernel(%arg0: i32, %arg1: memref<40xi32, #tpu.memory_space<smem>>, %arg2: memref<40xi32, #tpu.memory_space<smem>>, %arg3: memref<16x8xf32, #tpu.memory_space<vmem>>, %arg4: memref<1x16xi32, #tpu.memory_space<vmem>>, %arg5: memref<8x128xf32, #tpu.memory_space<vmem>>, %arg6: memref<1x128xf32, #tpu.memory_space<vmem>>, %arg7: memref<3x128x128xf32, #tpu.memory_space<vmem>>, %arg8: memref<3x1x128xf32, #tpu.memory_space<vmem>>, %arg9: memref<3x128x128xf32, #tpu.memory_space<vmem>>, %arg10: memref<3x1x128xf32, #tpu.memory_space<vmem>>, %arg11: memref<4x128x128xf32, #tpu.memory_space<vmem>>, %arg12: memref<1x128xf32, #tpu.memory_space<vmem>>, %arg13: memref<128x128xf32, #tpu.memory_space<vmem>>, %arg14: memref<1x128xf32, #tpu.memory_space<vmem>>, %arg15: memref<8x128xf32, #tpu.memory_space<vmem>>, %arg16: memref<16x128xf32, #tpu.memory_space<vmem>>, %arg17: memref<16x128xf32, #tpu.memory_space<vmem>>) attributes {dimension_semantics = [#tpu.dimension_semantics<arbitrary>], iteration_bounds = array<i64: 1>, scalar_prefetch = 2 : i64, scratch_operands = 2 : i64, tpu.core_type = #tpu.core_type<tc>, window_params = [{pipeline_mode = #tpu.pipeline_mode<synchronous>, transform_indices = @transform_0, window_bounds = array<i64: 16, 8>}, {pipeline_mode = #tpu.pipeline_mode<synchronous>, transform_indices = @transform_1, window_bounds = array<i64: 1, 16>}, {pipeline_mode = #tpu.pipeline_mode<synchronous>, transform_indices = @transform_2, window_bounds = array<i64: 8, 128>}, {pipeline_mode = #tpu.pipeline_mode<synchronous>, transform_indices = @transform_3, window_bounds = array<i64: 1, 128>}, {pipeline_mode = #tpu.pipeline_mode<synchronous>, transform_indices = @transform_4, window_bounds = array<i64: 3, 128, 128>}, {pipeline_mode = #tpu.pipeline_mode<synchronous>, transform_indices = @transform_5, window_bounds = array<i64: 3, 1, 128>}, {pipeline_mode = #tpu.pipeline_mode<synchronous>, transform_indices = @transform_6, window_bounds = array<i64: 3, 128, 128>}, {pipeline_mode = #tpu.pipeline_mode<synchronous>, transform_indices = @transform_7, window_bounds = array<i64: 3, 1, 128>}, {pipeline_mode = #tpu.pipeline_mode<synchronous>, transform_indices = @transform_8, window_bounds = array<i64: 4, 128, 128>}, {pipeline_mode = #tpu.pipeline_mode<synchronous>, transform_indices = @transform_9, window_bounds = array<i64: 1, 128>}, {pipeline_mode = #tpu.pipeline_mode<synchronous>, transform_indices = @transform_10, window_bounds = array<i64: 128, 128>}, {pipeline_mode = #tpu.pipeline_mode<synchronous>, transform_indices = @transform_11, window_bounds = array<i64: 1, 128>}, {pipeline_mode = #tpu.pipeline_mode<synchronous>, transform_indices = @transform_12, window_bounds = array<i64: 8, 128>}]} {
    %c0 = arith.constant 0 : index
    %c0_0 = arith.constant 0 : index
    %0 = vector.load %arg3[%c0, %c0_0] : memref<16x8xf32, #tpu.memory_space<vmem>>, vector<16x8xf32>
    %c0_1 = arith.constant 0 : index
    %c0_2 = arith.constant 0 : index
    %1 = vector.load %arg5[%c0_1, %c0_2] : memref<8x128xf32, #tpu.memory_space<vmem>>, vector<8x128xf32>
    %cst = arith.constant dense<0.000000e+00> : vector<16x128xf32>
    %2 = tpu.matmul %0, %1, %cst {dimension_numbers = #tpu.dot_dimension_numbers<[1], [0], [0], [1], [0, 0, 1, 1], [], []>} : vector<16x8xf32>, vector<8x128xf32>, vector<16x128xf32> -> vector<16x128xf32>
    %c0_3 = arith.constant 0 : index
    %c0_4 = arith.constant 0 : index
    %3 = vector.load %arg6[%c0_3, %c0_4] : memref<1x128xf32, #tpu.memory_space<vmem>>, vector<1x128xf32>
    %4 = vector.broadcast %3 : vector<1x128xf32> to vector<16x128xf32>
    %5 = arith.addf %2, %4 : vector<16x128xf32>
    %c0_5 = arith.constant 0 : index
    %c0_6 = arith.constant 0 : index
    %6 = vector.load %arg4[%c0_5, %c0_6] : memref<1x16xi32, #tpu.memory_space<vmem>>, vector<1x16xi32>
    %7 = tpu.iota {dimensions = array<i32: 0>} : vector<8x16xi32>
    %8 = vector.broadcast %6 : vector<1x16xi32> to vector<8x16xi32>
    %9 = arith.cmpi eq, %8, %7 : vector<8x16xi32>
    %10 = arith.extui %9 : vector<8x16xi1> to vector<8x16xi32>
    %11 = arith.sitofp %10 : vector<8x16xi32> to vector<8x16xf32>
    %cst_7 = arith.constant dense<0.000000e+00> : vector<8x128xf32>
    %12 = tpu.matmul %11, %5, %cst_7 {dimension_numbers = #tpu.dot_dimension_numbers<[1], [0], [0], [1], [0, 0, 1, 1], [], []>} : vector<8x16xf32>, vector<16x128xf32>, vector<8x128xf32> -> vector<8x128xf32>
    %c0_8 = arith.constant 0 : index
    %c0_9 = arith.constant 0 : index
    %c0_10 = arith.constant 0 : index
    %13 = vector.load %arg11[%c0_8, %c0_9, %c0_10] : memref<4x128x128xf32, #tpu.memory_space<vmem>>, vector<1x128x128xf32>
    %14 = vector.shape_cast %13 : vector<1x128x128xf32> to vector<128x128xf32>
    %cst_11 = arith.constant dense<0.000000e+00> : vector<8x128xf32>
    %15 = tpu.matmul %12, %14, %cst_11 {dimension_numbers = #tpu.dot_dimension_numbers<[1], [0], [0], [1], [0, 0, 1, 1], [], []>} : vector<8x128xf32>, vector<128x128xf32>, vector<8x128xf32> -> vector<8x128xf32>
    %c0_12 = arith.constant 0 : index
    %c0_13 = arith.constant 0 : index
    %16 = vector.load %arg12[%c0_12, %c0_13] : memref<1x128xf32, #tpu.memory_space<vmem>>, vector<1x128xf32>
    %17 = vector.broadcast %16 : vector<1x128xf32> to vector<8x128xf32>
    %18 = arith.addf %15, %17 : vector<8x128xf32>
    %c0_14 = arith.constant 0 : index
    %c0_15 = arith.constant 0 : index
    %19 = vector.load %arg16[%c0_14, %c0_15] : memref<16x128xf32, #tpu.memory_space<vmem>>, vector<16x128xf32>
    tpu.vector_store %arg16[%c0_14, %c0_15], %5 {strides = array<i32>} : memref<16x128xf32, #tpu.memory_space<vmem>>, vector<16x128xf32>,
    %c0_16 = arith.constant 0 : index
    %c0_17 = arith.constant 0 : index
    %20 = vector.load %arg17[%c0_16, %c0_17] : memref<16x128xf32, #tpu.memory_space<vmem>>, vector<16x128xf32>
    tpu.vector_store %arg17[%c0_16, %c0_17], %5 {strides = array<i32>} : memref<16x128xf32, #tpu.memory_space<vmem>>, vector<16x128xf32>,
    %c0_i32 = arith.constant 0 : i32
    %c40_i32 = arith.constant 40 : i32
    %21 = arith.addi %c0_i32, %c40_i32 : i32
    %c1_i32 = arith.constant 1 : i32
    scf.for %arg18 = %c0_i32 to %21 step %c1_i32  : i32 {
      %109 = arith.index_cast %arg18 : i32 to index
      %110 = memref.load %arg1[%109] : memref<40xi32, #tpu.memory_space<smem>>
      %111 = arith.index_cast %arg18 : i32 to index
      %112 = memref.load %arg2[%111] : memref<40xi32, #tpu.memory_space<smem>>
      %113 = arith.index_cast %112 : i32 to index
      %c0_109 = arith.constant 0 : index
      %114 = vector.load %arg17[%113, %c0_109] : memref<16x128xf32, #tpu.memory_space<vmem>>, vector<1x128xf32>
      %115 = arith.index_cast %110 : i32 to index
      %c0_110 = arith.constant 0 : index
      %116 = vector.load %arg16[%115, %c0_110] : memref<16x128xf32, #tpu.memory_space<vmem>>, vector<1x128xf32>
      %117 = arith.addf %114, %116 : vector<1x128xf32>
      %118 = arith.index_cast %112 : i32 to index
      %c0_111 = arith.constant 0 : index
      %119 = vector.load %arg17[%118, %c0_111] : memref<16x128xf32, #tpu.memory_space<vmem>>, vector<1x128xf32>
      tpu.vector_store %arg17[%118, %c0_111], %117 {strides = array<i32>} : memref<16x128xf32, #tpu.memory_space<vmem>>, vector<1x128xf32>,
    }
    %c40_i32_18 = arith.constant 40 : i32
    %c0_19 = arith.constant 0 : index
    %c0_20 = arith.constant 0 : index
    %22 = vector.load %arg17[%c0_19, %c0_20] : memref<16x128xf32, #tpu.memory_space<vmem>>, vector<16x128xf32>
    %c0_21 = arith.constant 0 : index
    %c0_22 = arith.constant 0 : index
    %c0_23 = arith.constant 0 : index
    %23 = vector.load %arg7[%c0_21, %c0_22, %c0_23] : memref<3x128x128xf32, #tpu.memory_space<vmem>>, vector<1x128x128xf32>
    %24 = vector.shape_cast %23 : vector<1x128x128xf32> to vector<128x128xf32>
    %cst_24 = arith.constant dense<0.000000e+00> : vector<16x128xf32>
    %25 = tpu.matmul %22, %24, %cst_24 {dimension_numbers = #tpu.dot_dimension_numbers<[1], [0], [0], [1], [0, 0, 1, 1], [], []>} : vector<16x128xf32>, vector<128x128xf32>, vector<16x128xf32> -> vector<16x128xf32>
    %c0_25 = arith.constant 0 : index
    %c0_26 = arith.constant 0 : index
    %c0_27 = arith.constant 0 : index
    %26 = vector.load %arg8[%c0_25, %c0_26, %c0_27] : memref<3x1x128xf32, #tpu.memory_space<vmem>>, vector<1x1x128xf32>
    %27 = vector.shape_cast %26 : vector<1x1x128xf32> to vector<1x128xf32>
    %28 = vector.broadcast %27 : vector<1x128xf32> to vector<16x128xf32>
    %29 = arith.addf %25, %28 : vector<16x128xf32>
    %cst_28 = arith.constant 0.000000e+00 : f32
    %30 = vector.broadcast %cst_28 : f32 to vector<16x128xf32>
    %31 = arith.maximumf %29, %30 : vector<16x128xf32>
    %c0_29 = arith.constant 0 : index
    %c0_30 = arith.constant 0 : index
    %c0_31 = arith.constant 0 : index
    %32 = vector.load %arg9[%c0_29, %c0_30, %c0_31] : memref<3x128x128xf32, #tpu.memory_space<vmem>>, vector<1x128x128xf32>
    %33 = vector.shape_cast %32 : vector<1x128x128xf32> to vector<128x128xf32>
    %cst_32 = arith.constant dense<0.000000e+00> : vector<16x128xf32>
    %34 = tpu.matmul %31, %33, %cst_32 {dimension_numbers = #tpu.dot_dimension_numbers<[1], [0], [0], [1], [0, 0, 1, 1], [], []>} : vector<16x128xf32>, vector<128x128xf32>, vector<16x128xf32> -> vector<16x128xf32>
    %c0_33 = arith.constant 0 : index
    %c0_34 = arith.constant 0 : index
    %c0_35 = arith.constant 0 : index
    %35 = vector.load %arg10[%c0_33, %c0_34, %c0_35] : memref<3x1x128xf32, #tpu.memory_space<vmem>>, vector<1x1x128xf32>
    %36 = vector.shape_cast %35 : vector<1x1x128xf32> to vector<1x128xf32>
    %37 = vector.broadcast %36 : vector<1x128xf32> to vector<16x128xf32>
    %38 = arith.addf %34, %37 : vector<16x128xf32>
    %cst_36 = arith.constant 0.000000e+00 : f32
    %39 = vector.broadcast %cst_36 : f32 to vector<16x128xf32>
    %40 = arith.maximumf %38, %39 : vector<16x128xf32>
    %cst_37 = arith.constant dense<0.000000e+00> : vector<8x128xf32>
    %41 = tpu.matmul %11, %40, %cst_37 {dimension_numbers = #tpu.dot_dimension_numbers<[1], [0], [0], [1], [0, 0, 1, 1], [], []>} : vector<8x16xf32>, vector<16x128xf32>, vector<8x128xf32> -> vector<8x128xf32>
    %c1 = arith.constant 1 : index
    %c0_38 = arith.constant 0 : index
    %c0_39 = arith.constant 0 : index
    %42 = vector.load %arg11[%c1, %c0_38, %c0_39] : memref<4x128x128xf32, #tpu.memory_space<vmem>>, vector<1x128x128xf32>
    %43 = vector.shape_cast %42 : vector<1x128x128xf32> to vector<128x128xf32>
    %cst_40 = arith.constant dense<0.000000e+00> : vector<8x128xf32>
    %44 = tpu.matmul %41, %43, %cst_40 {dimension_numbers = #tpu.dot_dimension_numbers<[1], [0], [0], [1], [0, 0, 1, 1], [], []>} : vector<8x128xf32>, vector<128x128xf32>, vector<8x128xf32> -> vector<8x128xf32>
    %45 = arith.addf %18, %44 : vector<8x128xf32>
    %c0_41 = arith.constant 0 : index
    %c0_42 = arith.constant 0 : index
    %46 = vector.load %arg16[%c0_41, %c0_42] : memref<16x128xf32, #tpu.memory_space<vmem>>, vector<16x128xf32>
    tpu.vector_store %arg16[%c0_41, %c0_42], %40 {strides = array<i32>} : memref<16x128xf32, #tpu.memory_space<vmem>>, vector<16x128xf32>,
    %c0_43 = arith.constant 0 : index
    %c0_44 = arith.constant 0 : index
    %47 = vector.load %arg17[%c0_43, %c0_44] : memref<16x128xf32, #tpu.memory_space<vmem>>, vector<16x128xf32>
    tpu.vector_store %arg17[%c0_43, %c0_44], %40 {strides = array<i32>} : memref<16x128xf32, #tpu.memory_space<vmem>>, vector<16x128xf32>,
    %c0_i32_45 = arith.constant 0 : i32
    %c40_i32_46 = arith.constant 40 : i32
    %48 = arith.addi %c0_i32_45, %c40_i32_46 : i32
    %c1_i32_47 = arith.constant 1 : i32
    scf.for %arg18 = %c0_i32_45 to %48 step %c1_i32_47  : i32 {
      %109 = arith.index_cast %arg18 : i32 to index
      %110 = memref.load %arg1[%109] : memref<40xi32, #tpu.memory_space<smem>>
      %111 = arith.index_cast %arg18 : i32 to index
      %112 = memref.load %arg2[%111] : memref<40xi32, #tpu.memory_space<smem>>
      %113 = arith.index_cast %112 : i32 to index
      %c0_109 = arith.constant 0 : index
      %114 = vector.load %arg17[%113, %c0_109] : memref<16x128xf32, #tpu.memory_space<vmem>>, vector<1x128xf32>
      %115 = arith.index_cast %110 : i32 to index
      %c0_110 = arith.constant 0 : index
      %116 = vector.load %arg16[%115, %c0_110] : memref<16x128xf32, #tpu.memory_space<vmem>>, vector<1x128xf32>
      %117 = arith.addf %114, %116 : vector<1x128xf32>
      %118 = arith.index_cast %112 : i32 to index
      %c0_111 = arith.constant 0 : index
      %119 = vector.load %arg17[%118, %c0_111] : memref<16x128xf32, #tpu.memory_space<vmem>>, vector<1x128xf32>
      tpu.vector_store %arg17[%118, %c0_111], %117 {strides = array<i32>} : memref<16x128xf32, #tpu.memory_space<vmem>>, vector<1x128xf32>,
    }
    %c40_i32_48 = arith.constant 40 : i32
    %c0_49 = arith.constant 0 : index
    %c0_50 = arith.constant 0 : index
    %49 = vector.load %arg17[%c0_49, %c0_50] : memref<16x128xf32, #tpu.memory_space<vmem>>, vector<16x128xf32>
    %c1_51 = arith.constant 1 : index
    %c0_52 = arith.constant 0 : index
    %c0_53 = arith.constant 0 : index
    %50 = vector.load %arg7[%c1_51, %c0_52, %c0_53] : memref<3x128x128xf32, #tpu.memory_space<vmem>>, vector<1x128x128xf32>
    %51 = vector.shape_cast %50 : vector<1x128x128xf32> to vector<128x128xf32>
    %cst_54 = arith.constant dense<0.000000e+00> : vector<16x128xf32>
    %52 = tpu.matmul %49, %51, %cst_54 {dimension_numbers = #tpu.dot_dimension_numbers<[1], [0], [0], [1], [0, 0, 1, 1], [], []>} : vector<16x128xf32>, vector<128x128xf32>, vector<16x128xf32> -> vector<16x128xf32>
    %c1_55 = arith.constant 1 : index
    %c0_56 = arith.constant 0 : index
    %c0_57 = arith.constant 0 : index
    %53 = vector.load %arg8[%c1_55, %c0_56, %c0_57] : memref<3x1x128xf32, #tpu.memory_space<vmem>>, vector<1x1x128xf32>
    %54 = vector.shape_cast %53 : vector<1x1x128xf32> to vector<1x128xf32>
    %55 = vector.broadcast %54 : vector<1x128xf32> to vector<16x128xf32>
    %56 = arith.addf %52, %55 : vector<16x128xf32>
    %cst_58 = arith.constant 0.000000e+00 : f32
    %57 = vector.broadcast %cst_58 : f32 to vector<16x128xf32>
    %58 = arith.maximumf %56, %57 : vector<16x128xf32>
    %c1_59 = arith.constant 1 : index
    %c0_60 = arith.constant 0 : index
    %c0_61 = arith.constant 0 : index
    %59 = vector.load %arg9[%c1_59, %c0_60, %c0_61] : memref<3x128x128xf32, #tpu.memory_space<vmem>>, vector<1x128x128xf32>
    %60 = vector.shape_cast %59 : vector<1x128x128xf32> to vector<128x128xf32>
    %cst_62 = arith.constant dense<0.000000e+00> : vector<16x128xf32>
    %61 = tpu.matmul %58, %60, %cst_62 {dimension_numbers = #tpu.dot_dimension_numbers<[1], [0], [0], [1], [0, 0, 1, 1], [], []>} : vector<16x128xf32>, vector<128x128xf32>, vector<16x128xf32> -> vector<16x128xf32>
    %c1_63 = arith.constant 1 : index
    %c0_64 = arith.constant 0 : index
    %c0_65 = arith.constant 0 : index
    %62 = vector.load %arg10[%c1_63, %c0_64, %c0_65] : memref<3x1x128xf32, #tpu.memory_space<vmem>>, vector<1x1x128xf32>
    %63 = vector.shape_cast %62 : vector<1x1x128xf32> to vector<1x128xf32>
    %64 = vector.broadcast %63 : vector<1x128xf32> to vector<16x128xf32>
    %65 = arith.addf %61, %64 : vector<16x128xf32>
    %66 = arith.addf %65, %5 : vector<16x128xf32>
    %cst_66 = arith.constant 0.000000e+00 : f32
    %67 = vector.broadcast %cst_66 : f32 to vector<16x128xf32>
    %68 = arith.maximumf %66, %67 : vector<16x128xf32>
    %cst_67 = arith.constant dense<0.000000e+00> : vector<8x128xf32>
    %69 = tpu.matmul %11, %68, %cst_67 {dimension_numbers = #tpu.dot_dimension_numbers<[1], [0], [0], [1], [0, 0, 1, 1], [], []>} : vector<8x16xf32>, vector<16x128xf32>, vector<8x128xf32> -> vector<8x128xf32>
    %c2 = arith.constant 2 : index
    %c0_68 = arith.constant 0 : index
    %c0_69 = arith.constant 0 : index
    %70 = vector.load %arg11[%c2, %c0_68, %c0_69] : memref<4x128x128xf32, #tpu.memory_space<vmem>>, vector<1x128x128xf32>
    %71 = vector.shape_cast %70 : vector<1x128x128xf32> to vector<128x128xf32>
    %cst_70 = arith.constant dense<0.000000e+00> : vector<8x128xf32>
    %72 = tpu.matmul %69, %71, %cst_70 {dimension_numbers = #tpu.dot_dimension_numbers<[1], [0], [0], [1], [0, 0, 1, 1], [], []>} : vector<8x128xf32>, vector<128x128xf32>, vector<8x128xf32> -> vector<8x128xf32>
    %73 = arith.addf %45, %72 : vector<8x128xf32>
    %c0_71 = arith.constant 0 : index
    %c0_72 = arith.constant 0 : index
    %74 = vector.load %arg16[%c0_71, %c0_72] : memref<16x128xf32, #tpu.memory_space<vmem>>, vector<16x128xf32>
    tpu.vector_store %arg16[%c0_71, %c0_72], %68 {strides = array<i32>} : memref<16x128xf32, #tpu.memory_space<vmem>>, vector<16x128xf32>,
    %c0_73 = arith.constant 0 : index
    %c0_74 = arith.constant 0 : index
    %75 = vector.load %arg17[%c0_73, %c0_74] : memref<16x128xf32, #tpu.memory_space<vmem>>, vector<16x128xf32>
    tpu.vector_store %arg17[%c0_73, %c0_74], %68 {strides = array<i32>} : memref<16x128xf32, #tpu.memory_space<vmem>>, vector<16x128xf32>,
    %c0_i32_75 = arith.constant 0 : i32
    %c40_i32_76 = arith.constant 40 : i32
    %76 = arith.addi %c0_i32_75, %c40_i32_76 : i32
    %c1_i32_77 = arith.constant 1 : i32
    scf.for %arg18 = %c0_i32_75 to %76 step %c1_i32_77  : i32 {
      %109 = arith.index_cast %arg18 : i32 to index
      %110 = memref.load %arg1[%109] : memref<40xi32, #tpu.memory_space<smem>>
      %111 = arith.index_cast %arg18 : i32 to index
      %112 = memref.load %arg2[%111] : memref<40xi32, #tpu.memory_space<smem>>
      %113 = arith.index_cast %112 : i32 to index
      %c0_109 = arith.constant 0 : index
      %114 = vector.load %arg17[%113, %c0_109] : memref<16x128xf32, #tpu.memory_space<vmem>>, vector<1x128xf32>
      %115 = arith.index_cast %110 : i32 to index
      %c0_110 = arith.constant 0 : index
      %116 = vector.load %arg16[%115, %c0_110] : memref<16x128xf32, #tpu.memory_space<vmem>>, vector<1x128xf32>
      %117 = arith.addf %114, %116 : vector<1x128xf32>
      %118 = arith.index_cast %112 : i32 to index
      %c0_111 = arith.constant 0 : index
      %119 = vector.load %arg17[%118, %c0_111] : memref<16x128xf32, #tpu.memory_space<vmem>>, vector<1x128xf32>
      tpu.vector_store %arg17[%118, %c0_111], %117 {strides = array<i32>} : memref<16x128xf32, #tpu.memory_space<vmem>>, vector<1x128xf32>,
    }
    %c40_i32_78 = arith.constant 40 : i32
    %c0_79 = arith.constant 0 : index
    %c0_80 = arith.constant 0 : index
    %77 = vector.load %arg17[%c0_79, %c0_80] : memref<16x128xf32, #tpu.memory_space<vmem>>, vector<16x128xf32>
    %c2_81 = arith.constant 2 : index
    %c0_82 = arith.constant 0 : index
    %c0_83 = arith.constant 0 : index
    %78 = vector.load %arg7[%c2_81, %c0_82, %c0_83] : memref<3x128x128xf32, #tpu.memory_space<vmem>>, vector<1x128x128xf32>
    %79 = vector.shape_cast %78 : vector<1x128x128xf32> to vector<128x128xf32>
    %cst_84 = arith.constant dense<0.000000e+00> : vector<16x128xf32>
    %80 = tpu.matmul %77, %79, %cst_84 {dimension_numbers = #tpu.dot_dimension_numbers<[1], [0], [0], [1], [0, 0, 1, 1], [], []>} : vector<16x128xf32>, vector<128x128xf32>, vector<16x128xf32> -> vector<16x128xf32>
    %c2_85 = arith.constant 2 : index
    %c0_86 = arith.constant 0 : index
    %c0_87 = arith.constant 0 : index
    %81 = vector.load %arg8[%c2_85, %c0_86, %c0_87] : memref<3x1x128xf32, #tpu.memory_space<vmem>>, vector<1x1x128xf32>
    %82 = vector.shape_cast %81 : vector<1x1x128xf32> to vector<1x128xf32>
    %83 = vector.broadcast %82 : vector<1x128xf32> to vector<16x128xf32>
    %84 = arith.addf %80, %83 : vector<16x128xf32>
    %cst_88 = arith.constant 0.000000e+00 : f32
    %85 = vector.broadcast %cst_88 : f32 to vector<16x128xf32>
    %86 = arith.maximumf %84, %85 : vector<16x128xf32>
    %c2_89 = arith.constant 2 : index
    %c0_90 = arith.constant 0 : index
    %c0_91 = arith.constant 0 : index
    %87 = vector.load %arg9[%c2_89, %c0_90, %c0_91] : memref<3x128x128xf32, #tpu.memory_space<vmem>>, vector<1x128x128xf32>
    %88 = vector.shape_cast %87 : vector<1x128x128xf32> to vector<128x128xf32>
    %cst_92 = arith.constant dense<0.000000e+00> : vector<16x128xf32>
    %89 = tpu.matmul %86, %88, %cst_92 {dimension_numbers = #tpu.dot_dimension_numbers<[1], [0], [0], [1], [0, 0, 1, 1], [], []>} : vector<16x128xf32>, vector<128x128xf32>, vector<16x128xf32> -> vector<16x128xf32>
    %c2_93 = arith.constant 2 : index
    %c0_94 = arith.constant 0 : index
    %c0_95 = arith.constant 0 : index
    %90 = vector.load %arg10[%c2_93, %c0_94, %c0_95] : memref<3x1x128xf32, #tpu.memory_space<vmem>>, vector<1x1x128xf32>
    %91 = vector.shape_cast %90 : vector<1x1x128xf32> to vector<1x128xf32>
    %92 = vector.broadcast %91 : vector<1x128xf32> to vector<16x128xf32>
    %93 = arith.addf %89, %92 : vector<16x128xf32>
    %cst_96 = arith.constant 0.000000e+00 : f32
    %94 = vector.broadcast %cst_96 : f32 to vector<16x128xf32>
    %95 = arith.maximumf %93, %94 : vector<16x128xf32>
    %cst_97 = arith.constant dense<0.000000e+00> : vector<8x128xf32>
    %96 = tpu.matmul %11, %95, %cst_97 {dimension_numbers = #tpu.dot_dimension_numbers<[1], [0], [0], [1], [0, 0, 1, 1], [], []>} : vector<8x16xf32>, vector<16x128xf32>, vector<8x128xf32> -> vector<8x128xf32>
    %c3 = arith.constant 3 : index
    %c0_98 = arith.constant 0 : index
    %c0_99 = arith.constant 0 : index
    %97 = vector.load %arg11[%c3, %c0_98, %c0_99] : memref<4x128x128xf32, #tpu.memory_space<vmem>>, vector<1x128x128xf32>
    %98 = vector.shape_cast %97 : vector<1x128x128xf32> to vector<128x128xf32>
    %cst_100 = arith.constant dense<0.000000e+00> : vector<8x128xf32>
    %99 = tpu.matmul %96, %98, %cst_100 {dimension_numbers = #tpu.dot_dimension_numbers<[1], [0], [0], [1], [0, 0, 1, 1], [], []>} : vector<8x128xf32>, vector<128x128xf32>, vector<8x128xf32> -> vector<8x128xf32>
    %100 = arith.addf %73, %99 : vector<8x128xf32>
    %cst_101 = arith.constant 0.000000e+00 : f32
    %101 = vector.broadcast %cst_101 : f32 to vector<8x128xf32>
    %102 = arith.maximumf %100, %101 : vector<8x128xf32>
    %c0_102 = arith.constant 0 : index
    %c0_103 = arith.constant 0 : index
    %103 = vector.load %arg13[%c0_102, %c0_103] : memref<128x128xf32, #tpu.memory_space<vmem>>, vector<128x128xf32>
    %cst_104 = arith.constant dense<0.000000e+00> : vector<8x128xf32>
    %104 = tpu.matmul %102, %103, %cst_104 {dimension_numbers = #tpu.dot_dimension_numbers<[1], [0], [0], [1], [0, 0, 1, 1], [], []>} : vector<8x128xf32>, vector<128x128xf32>, vector<8x128xf32> -> vector<8x128xf32>
    %c0_105 = arith.constant 0 : index
    %c0_106 = arith.constant 0 : index
    %105 = vector.load %arg14[%c0_105, %c0_106] : memref<1x128xf32, #tpu.memory_space<vmem>>, vector<1x128xf32>
    %106 = vector.broadcast %105 : vector<1x128xf32> to vector<8x128xf32>
    %107 = arith.addf %104, %106 : vector<8x128xf32>
    %c0_107 = arith.constant 0 : index
    %c0_108 = arith.constant 0 : index
    %108 = vector.load %arg15[%c0_107, %c0_108] : memref<8x128xf32, #tpu.memory_space<vmem>>, vector<8x128xf32>
    tpu.vector_store %arg15[%c0_107, %c0_108], %107 {strides = array<i32>} : memref<8x128xf32, #tpu.memory_space<vmem>>, vector<8x128xf32>,
    return
  }
  func.func @transform_0(%arg0: i32, %arg1: memref<40xi32, #tpu.memory_space<smem>>, %arg2: memref<40xi32, #tpu.memory_space<smem>>) -> (i32, i32) {
    %c0_i32 = arith.constant 0 : i32
    %c0_i32_0 = arith.constant 0 : i32
    %c0_i32_1 = arith.constant 0 : i32
    return %c0_i32, %c0_i32_0 : i32, i32
  }
  func.func @transform_1(%arg0: i32, %arg1: memref<40xi32, #tpu.memory_space<smem>>, %arg2: memref<40xi32, #tpu.memory_space<smem>>) -> (i32, i32) {
    %c0_i32 = arith.constant 0 : i32
    %c0_i32_0 = arith.constant 0 : i32
    %c0_i32_1 = arith.constant 0 : i32
    return %c0_i32, %c0_i32_0 : i32, i32
  }
  func.func @transform_2(%arg0: i32, %arg1: memref<40xi32, #tpu.memory_space<smem>>, %arg2: memref<40xi32, #tpu.memory_space<smem>>) -> (i32, i32) {
    %c0_i32 = arith.constant 0 : i32
    %c0_i32_0 = arith.constant 0 : i32
    %c0_i32_1 = arith.constant 0 : i32
    return %c0_i32, %c0_i32_0 : i32, i32
  }
  func.func @transform_3(%arg0: i32, %arg1: memref<40xi32, #tpu.memory_space<smem>>, %arg2: memref<40xi32, #tpu.memory_space<smem>>) -> (i32, i32) {
    %c0_i32 = arith.constant 0 : i32
    %c0_i32_0 = arith.constant 0 : i32
    %c0_i32_1 = arith.constant 0 : i32
    return %c0_i32, %c0_i32_0 : i32, i32
  }
  func.func @transform_4(%arg0: i32, %arg1: memref<40xi32, #tpu.memory_space<smem>>, %arg2: memref<40xi32, #tpu.memory_space<smem>>) -> (i32, i32, i32) {
    %c0_i32 = arith.constant 0 : i32
    %c0_i32_0 = arith.constant 0 : i32
    %c0_i32_1 = arith.constant 0 : i32
    %c0_i32_2 = arith.constant 0 : i32
    return %c0_i32, %c0_i32_0, %c0_i32_1 : i32, i32, i32
  }
  func.func @transform_5(%arg0: i32, %arg1: memref<40xi32, #tpu.memory_space<smem>>, %arg2: memref<40xi32, #tpu.memory_space<smem>>) -> (i32, i32, i32) {
    %c0_i32 = arith.constant 0 : i32
    %c0_i32_0 = arith.constant 0 : i32
    %c0_i32_1 = arith.constant 0 : i32
    %c0_i32_2 = arith.constant 0 : i32
    return %c0_i32, %c0_i32_0, %c0_i32_1 : i32, i32, i32
  }
  func.func @transform_6(%arg0: i32, %arg1: memref<40xi32, #tpu.memory_space<smem>>, %arg2: memref<40xi32, #tpu.memory_space<smem>>) -> (i32, i32, i32) {
    %c0_i32 = arith.constant 0 : i32
    %c0_i32_0 = arith.constant 0 : i32
    %c0_i32_1 = arith.constant 0 : i32
    %c0_i32_2 = arith.constant 0 : i32
    return %c0_i32, %c0_i32_0, %c0_i32_1 : i32, i32, i32
  }
  func.func @transform_7(%arg0: i32, %arg1: memref<40xi32, #tpu.memory_space<smem>>, %arg2: memref<40xi32, #tpu.memory_space<smem>>) -> (i32, i32, i32) {
    %c0_i32 = arith.constant 0 : i32
    %c0_i32_0 = arith.constant 0 : i32
    %c0_i32_1 = arith.constant 0 : i32
    %c0_i32_2 = arith.constant 0 : i32
    return %c0_i32, %c0_i32_0, %c0_i32_1 : i32, i32, i32
  }
  func.func @transform_8(%arg0: i32, %arg1: memref<40xi32, #tpu.memory_space<smem>>, %arg2: memref<40xi32, #tpu.memory_space<smem>>) -> (i32, i32, i32) {
    %c0_i32 = arith.constant 0 : i32
    %c0_i32_0 = arith.constant 0 : i32
    %c0_i32_1 = arith.constant 0 : i32
    %c0_i32_2 = arith.constant 0 : i32
    return %c0_i32, %c0_i32_0, %c0_i32_1 : i32, i32, i32
  }
  func.func @transform_9(%arg0: i32, %arg1: memref<40xi32, #tpu.memory_space<smem>>, %arg2: memref<40xi32, #tpu.memory_space<smem>>) -> (i32, i32) {
    %c0_i32 = arith.constant 0 : i32
    %c0_i32_0 = arith.constant 0 : i32
    %c0_i32_1 = arith.constant 0 : i32
    return %c0_i32, %c0_i32_0 : i32, i32
  }
  func.func @transform_10(%arg0: i32, %arg1: memref<40xi32, #tpu.memory_space<smem>>, %arg2: memref<40xi32, #tpu.memory_space<smem>>) -> (i32, i32) {
    %c0_i32 = arith.constant 0 : i32
    %c0_i32_0 = arith.constant 0 : i32
    %c0_i32_1 = arith.constant 0 : i32
    return %c0_i32, %c0_i32_0 : i32, i32
  }
  func.func @transform_11(%arg0: i32, %arg1: memref<40xi32, #tpu.memory_space<smem>>, %arg2: memref<40xi32, #tpu.memory_space<smem>>) -> (i32, i32) {
    %c0_i32 = arith.constant 0 : i32
    %c0_i32_0 = arith.constant 0 : i32
    %c0_i32_1 = arith.constant 0 : i32
    return %c0_i32, %c0_i32_0 : i32, i32
  }
  func.func @transform_12(%arg0: i32, %arg1: memref<40xi32, #tpu.memory_space<smem>>, %arg2: memref<40xi32, #tpu.memory_space<smem>>) -> (i32, i32) {
    %c0_i32 = arith.constant 0 : i32
    %c0_i32_0 = arith.constant 0 : i32
    %c0_i32_1 = arith.constant 0 : i32
    return %c0_i32, %c0_i32_0 : i32, i32
  }
}

</mosaic_0001>

<bundles_post_ra>
// kernel: embed_model_forward.1
= control target key start
LH: loop header
LB: loop body
LE: loop exit
PB: predicated region body
PF: predicated region fallthrough
CT: control target
= control target key end

     0   :  { %s2756_s0 = inlined_call_operand.vmem [shape: s32[40], index: 0, kind: input, shape index: {}]   ;;  %s2757_s2 = inlined_call_operand.vmem [shape: f32[16,8], index: 2, kind: input, shape index: {}]   ;;  %s2758_s3 = inlined_call_operand.vmem [shape: s32[1,16], index: 3, kind: input, shape index: {}]   ;;  %s2759_s4 = inlined_call_operand.vmem [shape: f32[8,128], index: 4, kind: input, shape index: {}]   ;;  %s2760_s5 = inlined_call_operand.vmem [shape: f32[1,128], index: 5, kind: input, shape index: {}]   ;;  %s2761_s6 = inlined_call_operand.hbm [shape: f32[3,128,128], index: 6, kind: input, shape index: {}]   ;;  %s2762_s7 = inlined_call_operand.vmem [shape: f32[3,1,128], index: 7, kind: input, shape index: {}]   ;;  %s2763_s8 = inlined_call_operand.hbm [shape: f32[3,128,128], index: 8, kind: input, shape index: {}]   ;;  %s2764_s9 = inlined_call_operand.vmem [shape: f32[3,1,128], index: 9, kind: input, shape index: {}]   ;;  %s2765_s10 = inlined_call_operand.hbm [shape: f32[4,128,128], index: 10, kind: input, shape index: {}]   ;;  %s2766_s11 = inlined_call_operand.vmem [shape: f32[1,128], index: 11, kind: input, shape index: {}]   ;;  %s2767_s12 = inlined_call_operand.hbm [shape: f32[128,128], index: 12, kind: input, shape index: {}]   ;;  %s2768_s13 = inlined_call_operand.vmem [shape: f32[1,128], index: 13, kind: input, shape index: {}]   ;;  %s2769_s14 = inlined_call_operand.vmem [shape: f32[8,128], index: 14, kind: output, shape index: {}]   ;;  %s2770_s1 = inlined_call_operand.vmem [shape: s32[40], index: 1, kind: input, shape index: {}]  }
   0x1   :  { %s19_s15 = sshll.u32 %s2756_s0, 4  ;;  %s23_s18 = sshll.u32 %s2770_s1, 4  ;;  %s20_s15 = int_to_ptr.vmem [resolvable:$true] %s19_s15  ;;  %s24_s18 = int_to_ptr.vmem [resolvable:$true] %s23_s18 }
   0x2   :  { %s2325_s19 = scalar_lea.vmem %s20_s15, 16  ;;  %p2330_p1 = scmp.lt.s32.totalorder %s20_s15, %s20_s15 }
   0x3   :  { %p2326_p0 = scmp.ne.s32.totalorder %s20_s15, %s2325_s19  ;;  %p2331_p2 = scmp.lt.s32.totalorder %s2325_s19, %s2325_s19 }
   0x5   :  { %p2332_p3 = por %p2331_p2, %p2330_p1 }
   0x7   :  { %p2333_p4 = pnand %p2332_p3, %p2326_p0 }
   0x9   :  { %2336 = shalt.err (!%p2333_p4)  }
   0xa   :  { %s2461_s20 = smov [#allocation5]   ;;  %s2337_s21 = scalar_lea.vmem %s24_s18, 16 }
   0xb   :  { %22 = dma.vmem_to_smem %s20_s15, 16, %s2461_s20, [#allocation4] }
   0xc   :  { %p2338_p5 = scmp.ne.s32.totalorder %s24_s18, %s2337_s21  ;;  %p2342_p6 = scmp.lt.s32.totalorder %s24_s18, %s24_s18 }
   0xd   :  { %p2343_p7 = scmp.lt.s32.totalorder %s2337_s21, %s2337_s21 }
   0xf   :  { %p2344_p8 = por %p2343_p7, %p2342_p6 }
  0x11   :  { %p2345_p9 = pnand %p2344_p8, %p2338_p5 }
  0x13   :  { %2348 = shalt.err (!%p2345_p9)  }
  0x14   :  { %s2462_s0 = smov [#allocation6]  }
  0x15   :  { %26 = dma.vmem_to_smem %s24_s18, 16, %s2462_s0, [#allocation4] }
  0x16   :  { %2441 = dma.done.wait [#allocation4], 32 }
  0x17   :  { %2442 = vsyncadd [#allocation4], 4294967264 }
  0x18   :  { %28 = sfence }
  0x19   :  { %29 = vsyncpa [#allocation8], 0 }
  0x1a   :  { %30 = vsyncpa [#allocation10], 0 }
  0x1b   :  { %31 = vsyncpa [#allocation13], 0  ;;  %s2463_s1 = smov [#allocation9]   ;;  %s2464_s23 = smov [#allocation7]  }
  0x1c   :  { %s59_s22 = sshll.u32 %s2463_s1, 4  ;;  %s45_s24 = sshll.u32 %s2464_s23, 4  ;;  %s60_s22 = int_to_ptr.vmem [resolvable:$true] %s59_s22  ;;  %s46_s24 = int_to_ptr.vmem [resolvable:$true] %s45_s24 }
  0x1d   :  { %s2357_s25 = scalar_lea.vmem %s60_s22, 6144  ;;  %p2362_p11 = scmp.lt.s32.totalorder %s60_s22, %s60_s22 }
  0x1e   :  { %p2358_p10 = scmp.ne.s32.totalorder %s60_s22, %s2357_s25  ;;  %p2363_p12 = scmp.lt.s32.totalorder %s2357_s25, %s2357_s25 }
  0x20   :  { %p2364_p13 = por %p2363_p12, %p2362_p11 }
  0x22   :  { %p2365_p0 = pnand %p2364_p13, %p2358_p10 }
  0x24   :  { %2368 = shalt.err (!%p2365_p0)
}
  0x25   :  { %s2465_s26 = smov 128   ;;  %s2466_s27 = smov 8  }
  0x26   :  { %65 = dma.hbm_to_vmem [thread:$0]  %s2763_s8, 6144, %s60_s22, [#allocation10], %s2465_s26, %s2465_s26, %s2466_s27  }
  0x27   :  { %s2377_s30 = scalar_lea.vmem %s46_s24, 6144  ;;  %p2382_p2 = scmp.lt.s32.totalorder %s46_s24, %s46_s24 }
  0x28   :  { %p2378_p1 = scmp.ne.s32.totalorder %s46_s24, %s2377_s30  ;;  %p2383_p3 = scmp.lt.s32.totalorder %s2377_s30, %s2377_s30 }
  0x2a   :  { %p2384_p4 = por %p2383_p3, %p2382_p2 }
  0x2c   :  { %p2385_p5 = pnand %p2384_p4, %p2378_p1 }
  0x2e   :  { %2388 = shalt.err (!%p2385_p5)
}
  0x2f   :  { %51 = dma.hbm_to_vmem [thread:$0]  %s2761_s6, 6144, %s46_s24, [#allocation8], %s2465_s26, %s2465_s26, %s2466_s27  }
  0x30   :  { %s2467_s17 = smov [#allocation11]   ;;  %s2468_s19 = smov [#allocation12]  }
  0x31   :  { %s73_s18 = sshll.u32 %s2467_s17, 4  ;;  %s87_s20 = sshll.u32 %s2468_s19, 4  ;;  %s74_s18 = int_to_ptr.vmem [resolvable:$true] %s73_s18  ;;  %s88_s20 = int_to_ptr.vmem [resolvable:$true] %s87_s20 }
  0x32   :  { %s2397_s8 = scalar_lea.vmem %s74_s18, 8192  ;;  %p2402_p7 = scmp.lt.s32.totalorder %s74_s18, %s74_s18 }
  0x33   :  { %p2398_p6 = scmp.ne.s32.totalorder %s74_s18, %s2397_s8  ;;  %p2403_p8 = scmp.lt.s32.totalorder %s2397_s8, %s2397_s8 }
  0x35   :  { %p2404_p9 = por %p2403_p8, %p2402_p7 }
  0x37   :  { %p2405_p10 = pnand %p2404_p9, %p2398_p6 }
  0x39   :  { %2408 = shalt.err (!%p2405_p10)
}
  0x3a   :  { %79 = dma.hbm_to_vmem [thread:$0]  %s2765_s10, 8192, %s74_s18, [#allocation10], %s2465_s26, %s2465_s26, %s2466_s27  }
  0x3b   :  { %s2417_s6 = scalar_lea.vmem %s88_s20, 2048  ;;  %p2422_p12 = scmp.lt.s32.totalorder %s88_s20, %s88_s20 }
  0x3c   :  { %p2418_p11 = scmp.ne.s32.totalorder %s88_s20, %s2417_s6  ;;  %p2423_p13 = scmp.lt.s32.totalorder %s2417_s6, %s2417_s6 }
  0x3e   :  { %p2424_p0 = por %p2423_p13, %p2422_p12 }
  0x40   :  { %p2425_p1 = pnand %p2424_p0, %p2418_p11 }
  0x42   :  { %2428 = shalt.err (!%p2425_p1)
}
  0x43   :  { %93 = dma.hbm_to_vmem [thread:$0]  %s2767_s12, 2048, %s88_s20, [#allocation13], %s2465_s26, %s2465_s26, %s2466_s27  }
  0x44   :  { %2443 = dma.done.wait [#allocation8], 6144  }
  0x45   :  { %2444 = vsyncadd [#allocation8], 4294961152 }
  0x46   :  { %2445 = dma.done.wait [#allocation10], 14336  }
  0x47   :  { %2446 = vsyncadd [#allocation10], 4294952960 }
  0x48   :  { %2447 = dma.done.wait [#allocation13], 2048  }
  0x49   :  { %2448 = vsyncadd [#allocation13], 4294965248  ;;  %vm118_vm0 = vcmask 64512   ;;  %v110_v0 = vld [vmem:[%s2759_s4] sm:$0xff]  ;;  %v109_v2 = vld [vmem:[%s2757_s2 + $0x8] sm:$0xff]  ;;  %v2469_v3 = vmov 0.0   ;;  %v201_v19 = vlaneseq }
  0x4a   :  { %v108_v1 = vld [vmem:[%s2757_s2] sm:$0xff]  ;;  %1873 = vmatprep.subr.mxu1 %v110_v0  ;;  %1885 = vmatprep.subr.mxu0 %v2469_v3  ;;  %vm2470_vm1 = vmmov 0   ;;  %v299_v4 = vld [vmem:[#allocation11 + $0x78] sm:$0xff]  ;;  %v298_v5 = vld [vmem:[#allocation11 + $0x70] sm:$0xff]  ;;  %vm210_vm3 = vcmask 130048   ;;  %s2449_s27 = smov 0  }
  0x4b   :  { %1875 = vmatprep.mubr.msk.f32.mxu1 %vm118_vm0, %v108_v1  ;;  %1874 = vmatpush3.msra.mxu1 %v110_v0  ;;  %v297_v6 = vld [vmem:[#allocation11 + $0x68] sm:$0xff]  ;;  %v296_v7 = vld [vmem:[#allocation11 + $0x60] sm:$0xff]  ;;  %v295_v8 = vld [vmem:[#allocation11 + $0x58] sm:$0xff]  ;;  %v202_v20 = vshrl.u32 %v201_v19, 7 }
  0x4c   :  { %1876 = vmatmul.mubr.msk.f32.vlgmr.msra.gmra.mxu1 %vm118_vm0, %v109_v2  ;;  %1878 = vmatprep.subr.mxu1 %v2469_v3  ;;  %v294_v9 = vld [vmem:[#allocation11 + $0x50] sm:$0xff]  ;;  %v293_v10 = vld [vmem:[#allocation11 + $0x48] sm:$0xff]  ;;  %v292_v11 = vld [vmem:[#allocation11 + $0x40] sm:$0xff] }
  0x4d   :  { %1882 = vmatprep.mubr.msk.f32.mxu1 %vm2470_vm1, %v2469_v3  ;;  %1917 = vmatprep.mubr.msk.f32.mxu0 %vm2470_vm1, %v2469_v3  ;;  %v291_v12 = vld [vmem:[#allocation11 + $0x38] sm:$0xff]  ;;  %v290_v13 = vld [vmem:[#allocation11 + $0x30] sm:$0xff]  ;;  %v289_v14 = vld [vmem:[#allocation11 + $0x28] sm:$0xff] }
  0x4e   :  { %1886 = vmatpush3.msra.mxu0 %v299_v4  ;;  %v288_v15 = vld [vmem:[#allocation11 + $0x20] sm:$0xff]  ;;  %v287_v16 = vld [vmem:[#allocation11 + $0x18] sm:$0xff]  ;;  %v286_v17 = vld [vmem:[#allocation11 + $0x10] sm:$0xff] }
  0x4f   :  { %1887 = vmatprep.subr.mxu0 %v2469_v3  ;;  %v285_v18 = vld [vmem:[#allocation11 + $0x8] sm:$0xff]  ;;  %v1647_v21 = vld [vmem:[%s2758_s3] ss:$0 sm:$0xff] }
  0x50   :  { %1888 = vmatpush3.msra.mxu0 %v298_v5  ;;  %v1644_v22 = vld [vmem:[%s2760_s5] ss:$0 sm:$0xff]  ;;  %vm207_vm2 = vcmp.eq.s32.totalorder %v1647_v21, %v202_v20 }
  0x51   :  { %1889 = vmatprep.subr.mxu0 %v2469_v3  ;;  %v2620_v27 = vsel %vm207_vm2, 1.0, %v2469_v3  ;;  %v284_v28 = vld [vmem:[#allocation11] sm:$0xff] }
  0x52   :  { %1890 = vmatpush3.msra.mxu0 %v297_v6  ;;  %v1650_v31 = vld [vmem:[%s2766_s11] ss:$0 sm:$0xff] }
  0x53   :  { %1891 = vmatprep.subr.mxu0 %v2469_v3 }
  0x54   :  { %1892 = vmatpush3.msra.mxu0 %v296_v7 }
  0x55   :  { %1893 = vmatprep.subr.mxu0 %v2469_v3 }
  0x56   :  { %1894 = vmatpush3.msra.mxu0 %v295_v8 }
  0x57   :  { %1895 = vmatprep.subr.mxu0 %v2469_v3 }
  0x58   :  { %1896 = vmatpush3.msra.mxu0 %v294_v9 }
  0x59   :  { %1897 = vmatprep.subr.mxu0 %v2469_v3 }
  0x5a   :  { %1898 = vmatpush3.msra.mxu0 %v293_v10 }
  0x5b   :  { %1899 = vmatprep.subr.mxu0 %v2469_v3 }
  0x5c   :  { %1900 = vmatpush3.msra.mxu0 %v292_v11 }
  0x5d   :  { %1901 = vmatprep.subr.mxu0 %v2469_v3 }
  0x5e   :  { %1902 = vmatpush3.msra.mxu0 %v291_v12 }
  0x5f   :  { %1903 = vmatprep.subr.mxu0 %v2469_v3 }
  0x60   :  { %1904 = vmatpush3.msra.mxu0 %v290_v13 }
  0x61   :  { %1905 = vmatprep.subr.mxu0 %v2469_v3 }
  0x62   :  { %1906 = vmatpush3.msra.mxu0 %v289_v14 }
  0x63   :  { %1907 = vmatprep.subr.mxu0 %v2469_v3 }
  0x64   :  { %1908 = vmatpush3.msra.mxu0 %v288_v15 }
  0x65   :  { %1909 = vmatprep.subr.mxu0 %v2469_v3 }
  0x66   :  { %1910 = vmatpush3.msra.mxu0 %v287_v16 }
  0x67   :  { %1911 = vmatprep.subr.mxu0 %v2469_v3 }
  0x68   :  { %1912 = vmatpush3.msra.mxu0 %v286_v17 }
  0x69   :  { %1913 = vmatprep.subr.mxu0 %v2469_v3 }
  0x6a   :  { %1914 = vmatpush3.msra.mxu0 %v285_v18 }
  0x6b   :  { %1915 = vmatprep.subr.mxu0 %v2469_v3 }
  0x6c   :  { %1916 = vmatpush3.msra.mxu0 %v284_v28 }
 0x10c   :  { %v1877_v23 = vpop.f32.mrf.mxu1 }
 0x10d   :  { %v2612_v24 = vadd.f32 %v1877_v23, %v1644_v22 }
 0x10e   :  { %v191_v25 = vpop.f32.mrf.mxu1 }
 0x10f   :  { %378 = vst [vmem:[#allocation2 + $0x8] sm:$0xff] %v2612_v24  ;;  %380 = vst [vmem:[#allocation3 + $0x8] sm:$0xff] %v2612_v24  ;;  %v2616_v26 = vadd.f32 %v1644_v22, %v191_v25  ;;  %1879 = vmatpush3.msra.mxu1 %v2612_v24 }
 0x110   :  { %1880 = vmatprep.subr.mxu1 %v2469_v3 }
 0x111   :  { %377 = vst [vmem:[#allocation2] sm:$0xff] %v2616_v26  ;;  %379 = vst [vmem:[#allocation3] sm:$0xff] %v2616_v26  ;;  %1881 = vmatpush3.msra.mxu1 %v2616_v26 }
 0x112   :  { %1883 = vmatmul.mubr.msk.f32.vlgmr.msra.gmra.mxu1 %vm210_vm3, %v2620_v27 }
 0x1d2   :  { %v280_v29 = vpop.f32.mrf.mxu1 }
 0x1d3   :  { %1918 = vmatmul.mubr.f32.vlgmr.msra.gmra.mxu0 %v280_v29 }
 0x1d4   :  { %v1884_v30 = vpop.f32.mrf.mxu1 }
 0x293   :  { %v373_v32 = vpop.f32.mrf.mxu0 }
 0x294   :  { %v2631_v33 = vadd.f32 %v1650_v31, %v373_v32 }
 0x295   :  { %v1919_v34 = vpop.f32.mrf.mxu0 }
 0x296 LB: > { %s387_s30 = sld [smem:[#allocation5 + %s2451_s27]]  ;;  %s2451_s27 = sphi %s2449_s27, %s386_s27  }
 0x297   : > { %s388_s15 = sld [smem:[#allocation6 + %s2451_s27]]  ;;  %s386_s27 = sadd.s32 1, %s2451_s27  }
 0x298   : > { %p383_p2 = scmp.ge.s32.totalorder %s386_s27, 40  }
 0x299   :  { %v412_v38 = vld [vmem:[#allocation7 + $0x78] sm:$0xff] (%p383_p2)  ;;  %v411_v39 = vld [vmem:[#allocation7 + $0x70] sm:$0xff] (%p383_p2)  ;;  %v410_v40 = vld [vmem:[#allocation7 + $0x68] sm:$0xff] (%p383_p2)  ;;  %s2453_s8 = smov (%p383_p2), 0  }
 0x29a   :  { %1920 = vmatprep.subr.mxu1 (%p383_p2), %v412_v38  ;;  %v409_v41 = vld [vmem:[#allocation7 + $0x60] sm:$0xff] (%p383_p2)  ;;  %v408_v43 = vld [vmem:[#allocation7 + $0x58] sm:$0xff] (%p383_p2)  ;;  %v511_v45 = vld [vmem:[#allocation9 + $0x70] sm:$0xff] (%p383_p2) }
 0x29b   :  { %1921 = vmatpush3.msra.mxu1 (%p383_p2), %v412_v38  ;;  %v512_v44 = vld [vmem:[#allocation9 + $0x78] sm:$0xff] (%p383_p2)  ;;  %v407_v46 = vld [vmem:[#allocation7 + $0x50] sm:$0xff] (%p383_p2)  ;;  %v510_v47 = vld [vmem:[#allocation9 + $0x68] sm:$0xff] (%p383_p2) }
 0x29c   : > { %s391_s16 = scalar_lea.vmem [#allocation2], %s387_s30  ;;  %1922 = vmatprep.subr.mxu1 (%p383_p2), %v411_v39  ;;  %1955 = vmatprep.subr.mxu0 (%p383_p2), %v512_v44  ;;  %v406_v48 = vld [vmem:[#allocation7 + $0x48] sm:$0xff] (%p383_p2)  ;;  %v509_v49 = vld [vmem:[#allocation9 + $0x60] sm:$0xff] (%p383_p2)  ;;  %v508_v51 = vld [vmem:[#allocation9 + $0x58] sm:$0xff] (%p383_p2) }
 0x29d   : > { %v392_v35 = vld [vmem:[%s391_s16] sm:$0x1]  ;;  %s389_s17 = scalar_lea.vmem [#allocation3], %s388_s15  ;;  %385 = sbr.rel (!%p383_p2) target bundleno = 662 (0x296), region = 122  ;;  %1923 = vmatpush3.msra.mxu1 (%p383_p2), %v411_v39  ;;  %1956 = vmatpush3.msra.mxu0 (%p383_p2), %v512_v44  ;;  %v404_v52 = vld [vmem:[#allocation7 + $0x38] sm:$0xff] (%p383_p2)  ;;  %v507_v53 = vld [vmem:[#allocation9 + $0x50] sm:$0xff] (%p383_p2) }
 0x29e   : > { %v390_v36 = vld [vmem:[%s389_s17] sm:$0x1]  ;;  %1924 = vmatprep.subr.mxu1 (%p383_p2), %v410_v40  ;;  %1957 = vmatprep.subr.mxu0 (%p383_p2), %v511_v45  ;;  %v403_v54 = vld [vmem:[#allocation7 + $0x30] sm:$0xff] (%p383_p2)  ;;  %v506_v55 = vld [vmem:[#allocation9 + $0x48] sm:$0xff] (%p383_p2) }
 0x29f   : > { %v393_v37 = vadd.f32 %v392_v35, %v390_v36  ;;  %1925 = vmatpush3.msra.mxu1 (%p383_p2), %v410_v40  ;;  %1958 = vmatpush3.msra.mxu0 (%p383_p2), %v511_v45  ;;  %v405_v50 = vld [vmem:[#allocation7 + $0x40] sm:$0xff] (%p383_p2)  ;;  %v402_v56 = vld [vmem:[#allocation7 + $0x28] sm:$0xff] (%p383_p2)  ;;  %v504_v59 = vld [vmem:[#allocation9 + $0x38] sm:$0xff] (%p383_p2) }
 0x2a0   :  { %1926 = vmatprep.subr.mxu1 (%p383_p2), %v409_v41  ;;  %1959 = vmatprep.subr.mxu0 (%p383_p2), %v510_v47  ;;  %v505_v57 = vld [vmem:[#allocation9 + $0x40] sm:$0xff] (%p383_p2)  ;;  %v400_v60 = vld [vmem:[#allocation7 + $0x18] sm:$0xff] (%p383_p2)  ;;  %v503_v61 = vld [vmem:[#allocation9 + $0x30] sm:$0xff] (%p383_p2) }
 0x2a1   : > { %394 = vst [vmem:[%s389_s17] sm:$0x1] %v393_v37  ;;  %1927 = vmatpush3.msra.mxu1 (%p383_p2), %v409_v41  ;;  %1960 = vmatpush3.msra.mxu0 (%p383_p2), %v510_v47  ;;  %v401_v58 = vld [vmem:[#allocation7 + $0x20] sm:$0xff] (%p383_p2)  ;;  %v399_v62 = vld [vmem:[#allocation7 + $0x10] sm:$0xff] (%p383_p2)  ;;  %v502_v63 = vld [vmem:[#allocation9 + $0x28] sm:$0xff] (%p383_p2) }
 0x2a2   :  { %1928 = vmatprep.subr.mxu1 %v408_v43  ;;  %1961 = vmatprep.subr.mxu0 %v509_v49  ;;  %v398_v0 = vld [vmem:[#allocation7 + $0x8] sm:$0xff]  ;;  %v501_v1 = vld [vmem:[#allocation9 + $0x20] sm:$0xff]  ;;  %v500_v5 = vld [vmem:[#allocation9 + $0x18] sm:$0xff] }
 0x2a3   :  { %1929 = vmatpush3.msra.mxu1 %v408_v43  ;;  %1962 = vmatpush3.msra.mxu0 %v509_v49  ;;  %v397_v2 = vld [vmem:[#allocation7] sm:$0xff]  ;;  %v499_v6 = vld [vmem:[#allocation9 + $0x10] sm:$0xff]  ;;  %v498_v7 = vld [vmem:[#allocation9 + $0x8] sm:$0xff] }
 0x2a4   :  { %1930 = vmatprep.subr.mxu1 %v407_v46  ;;  %1963 = vmatprep.subr.mxu0 %v508_v51  ;;  %v497_v8 = vld [vmem:[#allocation9] sm:$0xff]  ;;  %v683_v23 = vld [vmem:[#allocation11 + $0xf8] sm:$0xff]  ;;  %v682_v25 = vld [vmem:[#allocation11 + $0xf0] sm:$0xff] }
 0x2a5   :  { %1931 = vmatpush3.msra.mxu1 %v407_v46  ;;  %1964 = vmatpush3.msra.mxu0 %v508_v51  ;;  %v1651_v9 = vld [vmem:[%s2762_s7] ss:$0 sm:$0xff]  ;;  %v681_v28 = vld [vmem:[#allocation11 + $0xe8] sm:$0xff]  ;;  %v679_v30 = vld [vmem:[#allocation11 + $0xd8] sm:$0xff] }
 0x2a6   :  { %1932 = vmatprep.subr.mxu1 %v406_v48  ;;  %1965 = vmatprep.subr.mxu0 %v507_v53  ;;  %v1652_v16 = vld [vmem:[%s2764_s9] ss:$0 sm:$0xff]  ;;  %v678_v31 = vld [vmem:[#allocation11 + $0xd0] sm:$0xff]  ;;  %v677_v32 = vld [vmem:[#allocation11 + $0xc8] sm:$0xff] }
 0x2a7   :  { %1933 = vmatpush3.msra.mxu1 %v406_v48  ;;  %1966 = vmatpush3.msra.mxu0 %v507_v53  ;;  %v680_v29 = vld [vmem:[#allocation11 + $0xe0] sm:$0xff]  ;;  %v675_v35 = vld [vmem:[#allocation11 + $0xb8] sm:$0xff]  ;;  %v674_v36 = vld [vmem:[#allocation11 + $0xb0] sm:$0xff] }
 0x2a8   :  { %v395_v42 = vld [vmem:[#allocation3] sm:$0xff]  ;;  %1934 = vmatprep.subr.mxu1 %v405_v50  ;;  %1967 = vmatprep.subr.mxu0 %v506_v55  ;;  %v396_v4 = vld [vmem:[#allocation3 + $0x8] sm:$0xff]  ;;  %v676_v34 = vld [vmem:[#allocation11 + $0xc0] sm:$0xff] }
 0x2a9   :  { %1952 = vmatprep.mubr.f32.mxu1 %v395_v42  ;;  %1935 = vmatpush3.msra.mxu1 %v405_v50  ;;  %v673_v37 = vld [vmem:[#allocation11 + $0xa8] sm:$0xff]  ;;  %v672_v38 = vld [vmem:[#allocation11 + $0xa0] sm:$0xff]  ;;  %v671_v39 = vld [vmem:[#allocation11 + $0x98] sm:$0xff] }
 0x2aa   :  { %1936 = vmatprep.subr.mxu1 %v404_v52  ;;  %1968 = vmatpush3.msra.mxu0 %v506_v55  ;;  %v670_v40 = vld [vmem:[#allocation11 + $0x90] sm:$0xff]  ;;  %v669_v41 = vld [vmem:[#allocation11 + $0x88] sm:$0xff]  ;;  %v668_v42 = vld [vmem:[#allocation11 + $0x80] sm:$0xff] }
 0x2ab   :  { %1937 = vmatpush3.msra.mxu1 %v404_v52  ;;  %1969 = vmatprep.subr.mxu0 %v505_v57 }
 0x2ac   :  { %1938 = vmatprep.subr.mxu1 %v403_v54  ;;  %1970 = vmatpush3.msra.mxu0 %v505_v57 }
 0x2ad   :  { %1939 = vmatpush3.msra.mxu1 %v403_v54  ;;  %1971 = vmatprep.subr.mxu0 %v504_v59 }
 0x2ae   :  { %1940 = vmatprep.subr.mxu1 %v402_v56  ;;  %1972 = vmatpush3.msra.mxu0 %v504_v59 }
 0x2af   :  { %1941 = vmatpush3.msra.mxu1 %v402_v56  ;;  %1973 = vmatprep.subr.mxu0 %v503_v61 }
 0x2b0   :  { %1942 = vmatprep.subr.mxu1 %v401_v58  ;;  %1974 = vmatpush3.msra.mxu0 %v503_v61 }
 0x2b1   :  { %1943 = vmatpush3.msra.mxu1 %v401_v58  ;;  %1975 = vmatprep.subr.mxu0 %v502_v63 }
 0x2b2   :  { %1944 = vmatprep.subr.mxu1 %v400_v60  ;;  %1976 = vmatpush3.msra.mxu0 %v502_v63 }
 0x2b3   :  { %1945 = vmatpush3.msra.mxu1 %v400_v60  ;;  %1977 = vmatprep.subr.mxu0 %v501_v1 }
 0x2b4   :  { %1946 = vmatprep.subr.mxu1 %v399_v62  ;;  %1978 = vmatpush3.msra.mxu0 %v501_v1 }
 0x2b5   :  { %1947 = vmatpush3.msra.mxu1 %v399_v62  ;;  %1979 = vmatprep.subr.mxu0 %v500_v5 }
 0x2b6   :  { %1948 = vmatprep.subr.mxu1 %v398_v0  ;;  %1980 = vmatpush3.msra.mxu0 %v500_v5 }
 0x2b7   :  { %1949 = vmatpush3.msra.mxu1 %v398_v0  ;;  %1981 = vmatprep.subr.mxu0 %v499_v6 }
 0x2b8   :  { %1950 = vmatprep.subr.mxu1 %v397_v2  ;;  %1982 = vmatpush3.msra.mxu0 %v499_v6 }
 0x2b9   :  { %1951 = vmatpush3.msra.mxu1 %v397_v2  ;;  %1983 = vmatprep.subr.mxu0 %v498_v7 }
 0x2ba   :  { %1953 = vmatmul.mubr.f32.vlgmr.msra.gmra.mxu1 %v396_v4  ;;  %1990 = vmatprep.subr.mxu1 %v2469_v3 }
 0x2bb   :  { %1994 = vmatprep.mubr.msk.f32.mxu1 %vm2470_vm1, %v2469_v3  ;;  %1984 = vmatpush3.msra.mxu0 %v498_v7 }
 0x2bc   :  { %1985 = vmatprep.subr.mxu0 %v497_v8 }
 0x2bd   :  { %1986 = vmatpush3.msra.mxu0 %v497_v8 }
 0x37a   :  { %v1954_v10 = vpop.f32.mrf.mxu1 }
 0x37b   :  { %v492_v11 = vadd.f32 %v1954_v10, %v1651_v9 }
 0x37c   :  { %v486_v12 = vpop.f32.mrf.mxu1 }
 0x37d   :  { %v487_v13 = vadd.f32 %v1651_v9, %v486_v12  ;;  %v496_v15 = vmax.f32 %v492_v11, 0.0 }
 0x37f   :  { %v495_v14 = vmax.f32 %v487_v13, 0.0 }
 0x381   :  { %1987 = vmatprep.mubr.f32.mxu0 %v495_v14 }
 0x382   :  { %1988 = vmatmul.mubr.f32.vlgmr.msra.gmra.mxu0 %v496_v15 }
 0x442   :  { %v1989_v17 = vpop.f32.mrf.mxu0 }
 0x443   :  { %v592_v18 = vadd.f32 %v1989_v17, %v1652_v16 }
 0x444   :  { %v586_v19 = vpop.f32.mrf.mxu0 }
 0x445   :  { %v596_v20 = vmax.f32 %v592_v18, 0.0  ;;  %v587_v21 = vadd.f32 %v1652_v16, %v586_v19 }
 0x447   :  { %756 = vst [vmem:[#allocation2 + $0x8] sm:$0xff] %v596_v20  ;;  %758 = vst [vmem:[#allocation3 + $0x8] sm:$0xff] %v596_v20  ;;  %v595_v22 = vmax.f32 %v587_v21, 0.0  ;;  %1991 = vmatpush3.msra.mxu1 %v596_v20 }
 0x448   :  { %1992 = vmatprep.subr.mxu1 %v2469_v3 }
 0x449   :  { %755 = vst [vmem:[#allocation2] sm:$0xff] %v595_v22  ;;  %757 = vst [vmem:[#allocation3] sm:$0xff] %v595_v22  ;;  %1993 = vmatpush3.msra.mxu1 %v595_v22 }
 0x44a   :  { %1995 = vmatmul.mubr.msk.f32.vlgmr.msra.gmra.mxu1 %vm210_vm3, %v2620_v27  ;;  %1997 = vmatprep.subr.mxu1 %v2469_v3 }
 0x44b   :  { %1998 = vmatpush3.msra.mxu1 %v683_v23  ;;  %2029 = vmatprep.mubr.msk.f32.mxu1 %vm2470_vm1, %v2469_v3 }
 0x44c   :  { %1999 = vmatprep.subr.mxu1 %v2469_v3 }
 0x44d   :  { %2000 = vmatpush3.msra.mxu1 %v682_v25 }
 0x44e   :  { %2001 = vmatprep.subr.mxu1 %v2469_v3 }
 0x44f   :  { %2002 = vmatpush3.msra.mxu1 %v681_v28 }
 0x450   :  { %2003 = vmatprep.subr.mxu1 %v2469_v3 }
 0x451   :  { %2004 = vmatpush3.msra.mxu1 %v680_v29 }
 0x452   :  { %2005 = vmatprep.subr.mxu1 %v2469_v3 }
 0x453   :  { %2006 = vmatpush3.msra.mxu1 %v679_v30 }
 0x454   :  { %2007 = vmatprep.subr.mxu1 %v2469_v3 }
 0x455   :  { %2008 = vmatpush3.msra.mxu1 %v678_v31 }
 0x456   :  { %2009 = vmatprep.subr.mxu1 %v2469_v3 }
 0x457   :  { %2010 = vmatpush3.msra.mxu1 %v677_v32 }
 0x458   :  { %2011 = vmatprep.subr.mxu1 %v2469_v3 }
 0x459   :  { %2012 = vmatpush3.msra.mxu1 %v676_v34 }
 0x45a   :  { %2013 = vmatprep.subr.mxu1 %v2469_v3 }
 0x45b   :  { %2014 = vmatpush3.msra.mxu1 %v675_v35 }
 0x45c   :  { %2015 = vmatprep.subr.mxu1 %v2469_v3 }
 0x45d   :  { %2016 = vmatpush3.msra.mxu1 %v674_v36 }
 0x45e   :  { %2017 = vmatprep.subr.mxu1 %v2469_v3 }
 0x45f   :  { %2018 = vmatpush3.msra.mxu1 %v673_v37 }
 0x460   :  { %2019 = vmatprep.subr.mxu1 %v2469_v3 }
 0x461   :  { %2020 = vmatpush3.msra.mxu1 %v672_v38 }
 0x462   :  { %2021 = vmatprep.subr.mxu1 %v2469_v3 }
 0x463   :  { %2022 = vmatpush3.msra.mxu1 %v671_v39 }
 0x464   :  { %2023 = vmatprep.subr.mxu1 %v2469_v3 }
 0x465   :  { %2024 = vmatpush3.msra.mxu1 %v670_v40 }
 0x466   :  { %2025 = vmatprep.subr.mxu1 %v2469_v3 }
 0x467   :  { %2026 = vmatpush3.msra.mxu1 %v669_v41 }
 0x468   :  { %2027 = vmatprep.subr.mxu1 %v2469_v3 }
 0x469   :  { %2028 = vmatpush3.msra.mxu1 %v668_v42 }
 0x50a   :  { %v663_v43 = vpop.f32.mrf.mxu1 }
 0x50b   :  { %2030 = vmatmul.mubr.f32.vlgmr.msra.gmra.mxu1 %v663_v43 }
 0x50c   :  { %v1996_v44 = vpop.f32.mrf.mxu1 }
 0x5cb   :  { %v750_v45 = vpop.f32.mrf.mxu1 }
 0x5cc   :  { %v2664_v46 = vadd.f32 %v750_v45, %v2631_v33 }
 0x5cd   :  { %v2031_v47 = vpop.f32.mrf.mxu1 }
 0x5ce LB: > { %s765_s21 = sld [smem:[#allocation5 + %s2455_s8]]  ;;  %s2455_s8 = sphi %s2453_s8, %s764_s8  }
 0x5cf   : > { %s766_s0 = sld [smem:[#allocation6 + %s2455_s8]]  ;;  %s764_s8 = sadd.s32 1, %s2455_s8  }
 0x5d0   : > { %p761_p3 = scmp.ge.s32.totalorder %s764_s8, 40  }
 0x5d1   :  { %v791_v51 = vld [vmem:[#allocation7 + $0xf8] sm:$0xff] (%p761_p3)  ;;  %v790_v33 = vld [vmem:[#allocation7 + $0xf0] sm:$0xff] (%p761_p3)  ;;  %v789_v52 = vld [vmem:[#allocation7 + $0xe8] sm:$0xff] (%p761_p3)  ;;  %s2457_s25 = smov (%p761_p3), 0  }
 0x5d2   :  { %2032 = vmatprep.subr.mxu0 (%p761_p3), %v791_v51  ;;  %v788_v53 = vld [vmem:[#allocation7 + $0xe0] sm:$0xff] (%p761_p3)  ;;  %v787_v55 = vld [vmem:[#allocation7 + $0xd8] sm:$0xff] (%p761_p3)  ;;  %v892_v57 = vld [vmem:[#allocation9 + $0xf0] sm:$0xff] (%p761_p3) }
 0x5d3   :  { %2033 = vmatpush3.msra.mxu0 (%p761_p3), %v791_v51  ;;  %v893_v56 = vld [vmem:[#allocation9 + $0xf8] sm:$0xff] (%p761_p3)  ;;  %v786_v58 = vld [vmem:[#allocation7 + $0xd0] sm:$0xff] (%p761_p3)  ;;  %v891_v59 = vld [vmem:[#allocation9 + $0xe8] sm:$0xff] (%p761_p3) }
 0x5d4   : > { %s769_s6 = scalar_lea.vmem [#allocation2], %s765_s21  ;;  %2034 = vmatprep.subr.mxu0 (%p761_p3), %v790_v33  ;;  %2067 = vmatprep.subr.mxu1 (%p761_p3), %v893_v56  ;;  %v785_v60 = vld [vmem:[#allocation7 + $0xc8] sm:$0xff] (%p761_p3)  ;;  %v890_v61 = vld [vmem:[#allocation9 + $0xe0] sm:$0xff] (%p761_p3)  ;;  %v889_v63 = vld [vmem:[#allocation9 + $0xd8] sm:$0xff] (%p761_p3) }
 0x5d5   : > { %v770_v48 = vld [vmem:[%s769_s6] sm:$0x1]  ;;  %s767_s1 = scalar_lea.vmem [#allocation3], %s766_s0  ;;  %763 = sbr.rel (!%p761_p3) target bundleno = 1486 (0x5ce), region = 133  ;;  %2035 = vmatpush3.msra.mxu0 (%p761_p3), %v790_v33  ;;  %2068 = vmatpush3.msra.mxu1 (%p761_p3), %v893_v56  ;;  %v783_v0 = vld [vmem:[#allocation7 + $0xb8] sm:$0xff] (%p761_p3)  ;;  %v888_v1 = vld [vmem:[#allocation9 + $0xd0] sm:$0xff] (%p761_p3) }
 0x5d6   : > { %v768_v49 = vld [vmem:[%s767_s1] sm:$0x1]  ;;  %2036 = vmatprep.subr.mxu0 (%p761_p3), %v789_v52  ;;  %2069 = vmatprep.subr.mxu1 (%p761_p3), %v892_v57  ;;  %v782_v2 = vld [vmem:[#allocation7 + $0xb0] sm:$0xff] (%p761_p3)  ;;  %v887_v4 = vld [vmem:[#allocation9 + $0xc8] sm:$0xff] (%p761_p3) }
 0x5d7   : > { %v771_v50 = vadd.f32 %v770_v48, %v768_v49  ;;  %2037 = vmatpush3.msra.mxu0 (%p761_p3), %v789_v52  ;;  %2070 = vmatpush3.msra.mxu1 (%p761_p3), %v892_v57  ;;  %v784_v62 = vld [vmem:[#allocation7 + $0xc0] sm:$0xff] (%p761_p3)  ;;  %v781_v5 = vld [vmem:[#allocation7 + $0xa8] sm:$0xff] (%p761_p3)  ;;  %v885_v8 = vld [vmem:[#allocation9 + $0xb8] sm:$0xff] (%p761_p3) }
 0x5d8   :  { %2038 = vmatprep.subr.mxu0 (%p761_p3), %v788_v53  ;;  %2071 = vmatprep.subr.mxu1 (%p761_p3), %v891_v59  ;;  %v886_v6 = vld [vmem:[#allocation9 + $0xc0] sm:$0xff] (%p761_p3)  ;;  %v779_v9 = vld [vmem:[#allocation7 + $0x98] sm:$0xff] (%p761_p3)  ;;  %v884_v10 = vld [vmem:[#allocation9 + $0xb0] sm:$0xff] (%p761_p3) }
 0x5d9   : > { %772 = vst [vmem:[%s767_s1] sm:$0x1] %v771_v50  ;;  %2039 = vmatpush3.msra.mxu0 (%p761_p3), %v788_v53  ;;  %2072 = vmatpush3.msra.mxu1 (%p761_p3), %v891_v59  ;;  %v780_v7 = vld [vmem:[#allocation7 + $0xa0] sm:$0xff] (%p761_p3)  ;;  %v778_v11 = vld [vmem:[#allocation7 + $0x90] sm:$0xff] (%p761_p3)  ;;  %v883_v12 = vld [vmem:[#allocation9 + $0xa8] sm:$0xff] (%p761_p3) }
 0x5da   :  { %2040 = vmatprep.subr.mxu0 %v787_v55  ;;  %2073 = vmatprep.subr.mxu1 %v890_v61  ;;  %v777_v13 = vld [vmem:[#allocation7 + $0x88] sm:$0xff]  ;;  %v882_v14 = vld [vmem:[#allocation9 + $0xa0] sm:$0xff]  ;;  %v881_v17 = vld [vmem:[#allocation9 + $0x98] sm:$0xff] }
 0x5db   :  { %2041 = vmatpush3.msra.mxu0 %v787_v55  ;;  %2074 = vmatpush3.msra.mxu1 %v890_v61  ;;  %v776_v15 = vld [vmem:[#allocation7 + $0x80] sm:$0xff]  ;;  %v880_v18 = vld [vmem:[#allocation9 + $0x90] sm:$0xff]  ;;  %v879_v19 = vld [vmem:[#allocation9 + $0x88] sm:$0xff] }
 0x5dc   :  { %2042 = vmatprep.subr.mxu0 %v786_v58  ;;  %2075 = vmatprep.subr.mxu1 %v889_v63  ;;  %v878_v20 = vld [vmem:[#allocation9 + $0x80] sm:$0xff]  ;;  %v1067_v31 = vld [vmem:[#allocation11 + $0x178] sm:$0xff]  ;;  %v1066_v32 = vld [vmem:[#allocation11 + $0x170] sm:$0xff] }
 0x5dd   :  { %2043 = vmatpush3.msra.mxu0 %v786_v58  ;;  %2076 = vmatpush3.msra.mxu1 %v889_v63  ;;  %v1655_v21 = vld [vmem:[%s2762_s7 + $0x1] ss:$0 sm:$0xff]  ;;  %v1065_v34 = vld [vmem:[#allocation11 + $0x168] sm:$0xff]  ;;  %v1063_v36 = vld [vmem:[#allocation11 + $0x158] sm:$0xff] }
 0x5de   :  { %2044 = vmatprep.subr.mxu0 %v785_v60  ;;  %2077 = vmatprep.subr.mxu1 %v888_v1  ;;  %v1064_v35 = vld [vmem:[#allocation11 + $0x160] sm:$0xff]  ;;  %v1062_v37 = vld [vmem:[#allocation11 + $0x150] sm:$0xff]  ;;  %v1061_v38 = vld [vmem:[#allocation11 + $0x148] sm:$0xff] }
 0x5df   :  { %2045 = vmatpush3.msra.mxu0 %v785_v60  ;;  %2078 = vmatpush3.msra.mxu1 %v888_v1  ;;  %v1060_v39 = vld [vmem:[#allocation11 + $0x140] sm:$0xff]  ;;  %v1059_v40 = vld [vmem:[#allocation11 + $0x138] sm:$0xff]  ;;  %v1058_v41 = vld [vmem:[#allocation11 + $0x130] sm:$0xff] }
 0x5e0   :  { %v773_v54 = vld [vmem:[#allocation3] sm:$0xff]  ;;  %2046 = vmatprep.subr.mxu0 %v784_v62  ;;  %2079 = vmatprep.subr.mxu1 %v887_v4  ;;  %v774_v16 = vld [vmem:[#allocation3 + $0x8] sm:$0xff]  ;;  %v1057_v42 = vld [vmem:[#allocation11 + $0x128] sm:$0xff] }
 0x5e1   :  { %2064 = vmatprep.mubr.f32.mxu0 %v773_v54  ;;  %2047 = vmatpush3.msra.mxu0 %v784_v62  ;;  %v1056_v43 = vld [vmem:[#allocation11 + $0x120] sm:$0xff]  ;;  %v1055_v44 = vld [vmem:[#allocation11 + $0x118] sm:$0xff]  ;;  %v1054_v45 = vld [vmem:[#allocation11 + $0x110] sm:$0xff] }
 0x5e2   :  { %2048 = vmatprep.subr.mxu0 %v783_v0  ;;  %2080 = vmatpush3.msra.mxu1 %v887_v4  ;;  %v1053_v47 = vld [vmem:[#allocation11 + $0x108] sm:$0xff]  ;;  %v1657_v48 = vld [vmem:[%s2764_s9 + $0x1] ss:$0 sm:$0xff] }
 0x5e3   :  { %2049 = vmatpush3.msra.mxu0 %v783_v0  ;;  %2081 = vmatprep.subr.mxu1 %v886_v6  ;;  %v1052_v56 = vld [vmem:[#allocation11 + $0x100] sm:$0xff] }
 0x5e4   :  { %2050 = vmatprep.subr.mxu0 %v782_v2  ;;  %2082 = vmatpush3.msra.mxu1 %v886_v6 }
 0x5e5   :  { %2051 = vmatpush3.msra.mxu0 %v782_v2  ;;  %2083 = vmatprep.subr.mxu1 %v885_v8 }
 0x5e6   :  { %2052 = vmatprep.subr.mxu0 %v781_v5  ;;  %2084 = vmatpush3.msra.mxu1 %v885_v8 }
 0x5e7   :  { %2053 = vmatpush3.msra.mxu0 %v781_v5  ;;  %2085 = vmatprep.subr.mxu1 %v884_v10 }
 0x5e8   :  { %2054 = vmatprep.subr.mxu0 %v780_v7  ;;  %2086 = vmatpush3.msra.mxu1 %v884_v10 }
 0x5e9   :  { %2055 = vmatpush3.msra.mxu0 %v780_v7  ;;  %2087 = vmatprep.subr.mxu1 %v883_v12 }
 0x5ea   :  { %2056 = vmatprep.subr.mxu0 %v779_v9  ;;  %2088 = vmatpush3.msra.mxu1 %v883_v12 }
 0x5eb   :  { %2057 = vmatpush3.msra.mxu0 %v779_v9  ;;  %2089 = vmatprep.subr.mxu1 %v882_v14 }
 0x5ec   :  { %2058 = vmatprep.subr.mxu0 %v778_v11  ;;  %2090 = vmatpush3.msra.mxu1 %v882_v14 }
 0x5ed   :  { %2059 = vmatpush3.msra.mxu0 %v778_v11  ;;  %2091 = vmatprep.subr.mxu1 %v881_v17 }
 0x5ee   :  { %2060 = vmatprep.subr.mxu0 %v777_v13  ;;  %2092 = vmatpush3.msra.mxu1 %v881_v17 }
 0x5ef   :  { %2061 = vmatpush3.msra.mxu0 %v777_v13  ;;  %2093 = vmatprep.subr.mxu1 %v880_v18 }
 0x5f0   :  { %2062 = vmatprep.subr.mxu0 %v776_v15  ;;  %2094 = vmatpush3.msra.mxu1 %v880_v18 }
 0x5f1   :  { %2063 = vmatpush3.msra.mxu0 %v776_v15  ;;  %2095 = vmatprep.subr.mxu1 %v879_v19 }
 0x5f2   :  { %2065 = vmatmul.mubr.f32.vlgmr.msra.gmra.mxu0 %v774_v16  ;;  %2109 = vmatprep.subr.mxu0 %v2469_v3 }
 0x5f3   :  { %2141 = vmatprep.mubr.msk.f32.mxu0 %vm2470_vm1, %v2469_v3  ;;  %2096 = vmatpush3.msra.mxu1 %v879_v19 }
 0x5f4   :  { %2097 = vmatprep.subr.mxu1 %v878_v20  ;;  %2110 = vmatpush3.msra.mxu0 %v1067_v31 }
 0x5f5   :  { %2098 = vmatpush3.msra.mxu1 %v878_v20  ;;  %2111 = vmatprep.subr.mxu0 %v2469_v3 }
 0x5f6   :  { %2102 = vmatprep.subr.mxu1 %v2469_v3  ;;  %2112 = vmatpush3.msra.mxu0 %v1066_v32 }
 0x5f7   :  { %2113 = vmatprep.subr.mxu0 %v2469_v3 }
 0x5f8   :  { %2114 = vmatpush3.msra.mxu0 %v1065_v34 }
 0x5f9   :  { %2115 = vmatprep.subr.mxu0 %v2469_v3 }
 0x5fa   :  { %2116 = vmatpush3.msra.mxu0 %v1064_v35 }
 0x5fb   :  { %2117 = vmatprep.subr.mxu0 %v2469_v3 }
 0x5fc   :  { %2118 = vmatpush3.msra.mxu0 %v1063_v36 }
 0x5fd   :  { %2119 = vmatprep.subr.mxu0 %v2469_v3 }
 0x5fe   :  { %2120 = vmatpush3.msra.mxu0 %v1062_v37 }
 0x5ff   :  { %2121 = vmatprep.subr.mxu0 %v2469_v3 }
 0x600   :  { %2122 = vmatpush3.msra.mxu0 %v1061_v38 }
 0x601   :  { %2123 = vmatprep.subr.mxu0 %v2469_v3 }
 0x602   :  { %2124 = vmatpush3.msra.mxu0 %v1060_v39 }
 0x603   :  { %2125 = vmatprep.subr.mxu0 %v2469_v3 }
 0x604   :  { %2126 = vmatpush3.msra.mxu0 %v1059_v40 }
 0x605   :  { %2127 = vmatprep.subr.mxu0 %v2469_v3 }
 0x606   :  { %2128 = vmatpush3.msra.mxu0 %v1058_v41 }
 0x607   :  { %2129 = vmatprep.subr.mxu0 %v2469_v3 }
 0x608   :  { %2130 = vmatpush3.msra.mxu0 %v1057_v42 }
 0x609   :  { %2131 = vmatprep.subr.mxu0 %v2469_v3 }
 0x60a   :  { %2132 = vmatpush3.msra.mxu0 %v1056_v43 }
 0x60b   :  { %2133 = vmatprep.subr.mxu0 %v2469_v3 }
 0x60c   :  { %2134 = vmatpush3.msra.mxu0 %v1055_v44 }
 0x60d   :  { %2135 = vmatprep.subr.mxu0 %v2469_v3 }
 0x60e   :  { %2136 = vmatpush3.msra.mxu0 %v1054_v45 }
 0x60f   :  { %2137 = vmatprep.subr.mxu0 %v2469_v3 }
 0x610   :  { %2138 = vmatpush3.msra.mxu0 %v1053_v47 }
 0x611   :  { %2139 = vmatprep.subr.mxu0 %v2469_v3 }
 0x612   :  { %2140 = vmatpush3.msra.mxu0 %v1052_v56 }
 0x6b2   :  { %v2066_v22 = vpop.f32.mrf.mxu0 }
 0x6b3   :  { %v872_v23 = vadd.f32 %v2066_v22, %v1655_v21 }
 0x6b4   :  { %v866_v25 = vpop.f32.mrf.mxu0 }
 0x6b5   :  { %v867_v28 = vadd.f32 %v1655_v21, %v866_v25  ;;  %v876_v30 = vmax.f32 %v872_v23, 0.0 }
 0x6b7   :  { %v875_v29 = vmax.f32 %v867_v28, 0.0 }
 0x6b9   :  { %2099 = vmatprep.mubr.f32.mxu1 %v875_v29 }
 0x6ba   :  { %2100 = vmatmul.mubr.f32.vlgmr.msra.gmra.mxu1 %v876_v30 }
 0x6bb   :  { %2106 = vmatprep.mubr.msk.f32.mxu1 %vm2470_vm1, %v2469_v3 }
 0x77a   :  { %v2101_v49 = vpop.f32.mrf.mxu1 }
 0x77b   :  { %v974_v50 = vadd.f32 %v2101_v49, %v1657_v48 }
 0x77c   :  { %v968_v51 = vpop.f32.mrf.mxu1 }
 0x77d   :  { %v978_v33 = vadd.f32 %v974_v50, %v2612_v24  ;;  %v969_v52 = vadd.f32 %v1657_v48, %v968_v51 }
 0x77f   :  { %v980_v53 = vmax.f32 %v978_v33, 0.0  ;;  %v977_v54 = vadd.f32 %v969_v52, %v2616_v26 }
 0x781   :  { %1140 = vst [vmem:[#allocation2 + $0x8] sm:$0xff] %v980_v53  ;;  %1142 = vst [vmem:[#allocation3 + $0x8] sm:$0xff] %v980_v53  ;;  %v979_v55 = vmax.f32 %v977_v54, 0.0  ;;  %2103 = vmatpush3.msra.mxu1 %v980_v53 }
 0x782   :  { %2104 = vmatprep.subr.mxu1 %v2469_v3 }
 0x783   :  { %1139 = vst [vmem:[#allocation2] sm:$0xff] %v979_v55  ;;  %1141 = vst [vmem:[#allocation3] sm:$0xff] %v979_v55  ;;  %2105 = vmatpush3.msra.mxu1 %v979_v55 }
 0x784   :  { %2107 = vmatmul.mubr.msk.f32.vlgmr.msra.gmra.mxu1 %vm210_vm3, %v2620_v27 }
 0x844   :  { %v1047_v57 = vpop.f32.mrf.mxu1 }
 0x845   :  { %2142 = vmatmul.mubr.f32.vlgmr.msra.gmra.mxu0 %v1047_v57 }
 0x846   :  { %v2108_v24 = vpop.f32.mrf.mxu1 }
 0x905   :  { %v1134_v58 = vpop.f32.mrf.mxu0 }
 0x906   :  { %v2699_v26 = vadd.f32 %v1134_v58, %v2664_v46 }
 0x907   :  { %v2143_v59 = vpop.f32.mrf.mxu0 }
 0x908 LB: > { %s1149_s28 = sld [smem:[#allocation5 + %s2459_s25]]  ;;  %s2459_s25 = sphi %s2457_s25, %s1148_s25  }
 0x909   : > { %s1150_s29 = sld [smem:[#allocation6 + %s2459_s25]]  ;;  %s1148_s25 = sadd.s32 1, %s2459_s25  }
 0x90a   : > { %p1145_p4 = scmp.ge.s32.totalorder %s1148_s25, 40  }
 0x90b   :  { %v1175_v63 = vld [vmem:[#allocation7 + $0x178] sm:$0xff] (%p1145_p4)  ;;  %v1174_v46 = vld [vmem:[#allocation7 + $0x170] sm:$0xff] (%p1145_p4)  ;;  %v1173_v0 = vld [vmem:[#allocation7 + $0x168] sm:$0xff] (%p1145_p4) }
 0x90c   :  { %2144 = vmatprep.subr.mxu1 (%p1145_p4), %v1175_v63  ;;  %v1172_v1 = vld [vmem:[#allocation7 + $0x160] sm:$0xff] (%p1145_p4)  ;;  %v1171_v4 = vld [vmem:[#allocation7 + $0x158] sm:$0xff] (%p1145_p4)  ;;  %v1276_v6 = vld [vmem:[#allocation9 + $0x170] sm:$0xff] (%p1145_p4) }
 0x90d   :  { %2145 = vmatpush3.msra.mxu1 (%p1145_p4), %v1175_v63  ;;  %v1277_v5 = vld [vmem:[#allocation9 + $0x178] sm:$0xff] (%p1145_p4)  ;;  %v1170_v7 = vld [vmem:[#allocation7 + $0x150] sm:$0xff] (%p1145_p4)  ;;  %v1275_v8 = vld [vmem:[#allocation9 + $0x168] sm:$0xff] (%p1145_p4) }
 0x90e   : > { %s1153_s2 = scalar_lea.vmem [#allocation2], %s1149_s28  ;;  %2146 = vmatprep.subr.mxu1 (%p1145_p4), %v1174_v46  ;;  %2179 = vmatprep.subr.mxu0 (%p1145_p4), %v1277_v5  ;;  %v1169_v9 = vld [vmem:[#allocation7 + $0x148] sm:$0xff] (%p1145_p4)  ;;  %v1274_v10 = vld [vmem:[#allocation9 + $0x160] sm:$0xff] (%p1145_p4)  ;;  %v1273_v12 = vld [vmem:[#allocation9 + $0x158] sm:$0xff] (%p1145_p4) }
 0x90f   : > { %v1154_v60 = vld [vmem:[%s1153_s2] sm:$0x1]  ;;  %s1151_s4 = scalar_lea.vmem [#allocation3], %s1150_s29  ;;  %1147 = sbr.rel (!%p1145_p4) target bundleno = 2312 (0x908), region = 144  ;;  %2147 = vmatpush3.msra.mxu1 (%p1145_p4), %v1174_v46  ;;  %2180 = vmatpush3.msra.mxu0 (%p1145_p4), %v1277_v5  ;;  %v1167_v13 = vld [vmem:[#allocation7 + $0x138] sm:$0xff] (%p1145_p4)  ;;  %v1272_v14 = vld [vmem:[#allocation9 + $0x150] sm:$0xff] (%p1145_p4) }
 0x910   : > { %v1152_v61 = vld [vmem:[%s1151_s4] sm:$0x1]  ;;  %2148 = vmatprep.subr.mxu1 (%p1145_p4), %v1173_v0  ;;  %2181 = vmatprep.subr.mxu0 (%p1145_p4), %v1276_v6  ;;  %v1166_v15 = vld [vmem:[#allocation7 + $0x130] sm:$0xff] (%p1145_p4)  ;;  %v1271_v16 = vld [vmem:[#allocation9 + $0x148] sm:$0xff] (%p1145_p4) }
 0x911   : > { %v1155_v62 = vadd.f32 %v1154_v60, %v1152_v61  ;;  %2149 = vmatpush3.msra.mxu1 (%p1145_p4), %v1173_v0  ;;  %2182 = vmatpush3.msra.mxu0 (%p1145_p4), %v1276_v6  ;;  %v1168_v11 = vld [vmem:[#allocation7 + $0x140] sm:$0xff] (%p1145_p4)  ;;  %v1165_v17 = vld [vmem:[#allocation7 + $0x128] sm:$0xff] (%p1145_p4)  ;;  %v1269_v20 = vld [vmem:[#allocation9 + $0x138] sm:$0xff] (%p1145_p4) }
 0x912   :  { %2150 = vmatprep.subr.mxu1 (%p1145_p4), %v1172_v1  ;;  %2183 = vmatprep.subr.mxu0 (%p1145_p4), %v1275_v8  ;;  %v1270_v18 = vld [vmem:[#allocation9 + $0x140] sm:$0xff] (%p1145_p4)  ;;  %v1163_v21 = vld [vmem:[#allocation7 + $0x118] sm:$0xff] (%p1145_p4)  ;;  %v1268_v22 = vld [vmem:[#allocation9 + $0x130] sm:$0xff] (%p1145_p4) }
 0x913   : > { %1156 = vst [vmem:[%s1151_s4] sm:$0x1] %v1155_v62  ;;  %2151 = vmatpush3.msra.mxu1 (%p1145_p4), %v1172_v1  ;;  %2184 = vmatpush3.msra.mxu0 (%p1145_p4), %v1275_v8  ;;  %v1164_v19 = vld [vmem:[#allocation7 + $0x120] sm:$0xff] (%p1145_p4)  ;;  %v1162_v23 = vld [vmem:[#allocation7 + $0x110] sm:$0xff] (%p1145_p4)  ;;  %v1267_v25 = vld [vmem:[#allocation9 + $0x128] sm:$0xff] (%p1145_p4) }
 0x914   :  { %2152 = vmatprep.subr.mxu1 %v1171_v4  ;;  %2185 = vmatprep.subr.mxu0 %v1274_v10  ;;  %v1161_v28 = vld [vmem:[#allocation7 + $0x108] sm:$0xff]  ;;  %v1266_v29 = vld [vmem:[#allocation9 + $0x120] sm:$0xff]  ;;  %v1265_v32 = vld [vmem:[#allocation9 + $0x118] sm:$0xff] }
 0x915   :  { %2153 = vmatpush3.msra.mxu1 %v1171_v4  ;;  %2186 = vmatpush3.msra.mxu0 %v1274_v10  ;;  %v1160_v30 = vld [vmem:[#allocation7 + $0x100] sm:$0xff]  ;;  %v1264_v34 = vld [vmem:[#allocation9 + $0x110] sm:$0xff]  ;;  %v1263_v35 = vld [vmem:[#allocation9 + $0x108] sm:$0xff] }
 0x916   :  { %2154 = vmatprep.subr.mxu1 %v1170_v7  ;;  %2187 = vmatprep.subr.mxu0 %v1273_v12  ;;  %v1262_v36 = vld [vmem:[#allocation9 + $0x100] sm:$0xff]  ;;  %v1449_v33 = vld [vmem:[#allocation11 + $0x1f8] sm:$0xff]  ;;  %v1448_v52 = vld [vmem:[#allocation11 + $0x1f0] sm:$0xff] }
 0x917   :  { %2155 = vmatpush3.msra.mxu1 %v1170_v7  ;;  %2188 = vmatpush3.msra.mxu0 %v1273_v12  ;;  %v1660_v37 = vld [vmem:[%s2762_s7 + $0x2] ss:$0 sm:$0xff]  ;;  %v1447_v53 = vld [vmem:[#allocation11 + $0x1e8] sm:$0xff]  ;;  %v1445_v55 = vld [vmem:[#allocation11 + $0x1d8] sm:$0xff] }
 0x918   :  { %2156 = vmatprep.subr.mxu1 %v1169_v9  ;;  %2189 = vmatprep.subr.mxu0 %v1272_v14  ;;  %v1662_v44 = vld [vmem:[%s2764_s9 + $0x2] ss:$0 sm:$0xff]  ;;  %v1443_v56 = vld [vmem:[#allocation11 + $0x1c8] sm:$0xff]  ;;  %v1441_v24 = vld [vmem:[#allocation11 + $0x1b8] sm:$0xff] }
 0x919   :  { %2157 = vmatpush3.msra.mxu1 %v1169_v9  ;;  %2190 = vmatpush3.msra.mxu0 %v1272_v14  ;;  %v1446_v54 = vld [vmem:[#allocation11 + $0x1e0] sm:$0xff]  ;;  %v1440_v58 = vld [vmem:[#allocation11 + $0x1b0] sm:$0xff]  ;;  %v1439_v59 = vld [vmem:[#allocation11 + $0x1a8] sm:$0xff] }
 0x91a   :  { %v1157_v2 = vld [vmem:[#allocation3] sm:$0xff]  ;;  %2158 = vmatprep.subr.mxu1 %v1168_v11  ;;  %2191 = vmatprep.subr.mxu0 %v1271_v16  ;;  %v1158_v31 = vld [vmem:[#allocation3 + $0x8] sm:$0xff]  ;;  %v1442_v57 = vld [vmem:[#allocation11 + $0x1c0] sm:$0xff] }
 0x91b   :  { %2176 = vmatprep.mubr.f32.mxu1 %v1157_v2  ;;  %2159 = vmatpush3.msra.mxu1 %v1168_v11  ;;  %v1438_v60 = vld [vmem:[#allocation11 + $0x1a0] sm:$0xff]  ;;  %v1437_v61 = vld [vmem:[#allocation11 + $0x198] sm:$0xff]  ;;  %v1436_v62 = vld [vmem:[#allocation11 + $0x190] sm:$0xff] }
 0x91c   :  { %2160 = vmatprep.subr.mxu1 %v1167_v13  ;;  %2192 = vmatpush3.msra.mxu0 %v1271_v16  ;;  %v1435_v63 = vld [vmem:[#allocation11 + $0x188] sm:$0xff]  ;;  %v1434_v46 = vld [vmem:[#allocation11 + $0x180] sm:$0xff]  ;;  %v1537_v0 = vld [vmem:[#allocation12 + $0x78] sm:$0xff] }
 0x91d   :  { %2161 = vmatpush3.msra.mxu1 %v1167_v13  ;;  %2193 = vmatprep.subr.mxu0 %v1270_v18  ;;  %v1536_v1 = vld [vmem:[#allocation12 + $0x70] sm:$0xff]  ;;  %v1535_v2 = vld [vmem:[#allocation12 + $0x68] sm:$0xff]  ;;  %v1534_v4 = vld [vmem:[#allocation12 + $0x60] sm:$0xff] }
 0x91e   :  { %2162 = vmatprep.subr.mxu1 %v1166_v15  ;;  %2194 = vmatpush3.msra.mxu0 %v1270_v18  ;;  %v1533_v5 = vld [vmem:[#allocation12 + $0x58] sm:$0xff]  ;;  %v1532_v6 = vld [vmem:[#allocation12 + $0x50] sm:$0xff]  ;;  %v1531_v7 = vld [vmem:[#allocation12 + $0x48] sm:$0xff] }
 0x91f   :  { %2163 = vmatpush3.msra.mxu1 %v1166_v15  ;;  %2195 = vmatprep.subr.mxu0 %v1269_v20  ;;  %v1530_v8 = vld [vmem:[#allocation12 + $0x40] sm:$0xff]  ;;  %v1529_v9 = vld [vmem:[#allocation12 + $0x38] sm:$0xff]  ;;  %v1528_v10 = vld [vmem:[#allocation12 + $0x30] sm:$0xff] }
 0x920   :  { %2164 = vmatprep.subr.mxu1 %v1165_v17  ;;  %2196 = vmatpush3.msra.mxu0 %v1269_v20  ;;  %v1527_v11 = vld [vmem:[#allocation12 + $0x28] sm:$0xff]  ;;  %v1526_v12 = vld [vmem:[#allocation12 + $0x20] sm:$0xff]  ;;  %v1525_v13 = vld [vmem:[#allocation12 + $0x18] sm:$0xff] }
 0x921   :  { %2165 = vmatpush3.msra.mxu1 %v1165_v17  ;;  %2197 = vmatprep.subr.mxu0 %v1268_v22  ;;  %v1524_v16 = vld [vmem:[#allocation12 + $0x10] sm:$0xff]  ;;  %v1523_v17 = vld [vmem:[#allocation12 + $0x8] sm:$0xff]  ;;  %v1522_v18 = vld [vmem:[#allocation12] sm:$0xff] }
 0x922   :  { %2166 = vmatprep.subr.mxu1 %v1164_v19  ;;  %2198 = vmatpush3.msra.mxu0 %v1268_v22 }
 0x923   :  { %2167 = vmatpush3.msra.mxu1 %v1164_v19  ;;  %2199 = vmatprep.subr.mxu0 %v1267_v25 }
 0x924   :  { %2168 = vmatprep.subr.mxu1 %v1163_v21  ;;  %2200 = vmatpush3.msra.mxu0 %v1267_v25 }
 0x925   :  { %2169 = vmatpush3.msra.mxu1 %v1163_v21  ;;  %2201 = vmatprep.subr.mxu0 %v1266_v29 }
 0x926   :  { %2170 = vmatprep.subr.mxu1 %v1162_v23  ;;  %2202 = vmatpush3.msra.mxu0 %v1266_v29 }
 0x927   :  { %2171 = vmatpush3.msra.mxu1 %v1162_v23  ;;  %2203 = vmatprep.subr.mxu0 %v1265_v32  ;;  %v1664_v23 = vld [vmem:[%s2768_s13] ss:$0 sm:$0xff] }
 0x928   :  { %2172 = vmatprep.subr.mxu1 %v1161_v28  ;;  %2204 = vmatpush3.msra.mxu0 %v1265_v32 }
 0x929   :  { %2173 = vmatpush3.msra.mxu1 %v1161_v28  ;;  %2205 = vmatprep.subr.mxu0 %v1264_v34 }
 0x92a   :  { %2174 = vmatprep.subr.mxu1 %v1160_v30  ;;  %2206 = vmatpush3.msra.mxu0 %v1264_v34 }
 0x92b   :  { %2175 = vmatpush3.msra.mxu1 %v1160_v30  ;;  %2207 = vmatprep.subr.mxu0 %v1263_v35 }
 0x92c   :  { %2177 = vmatmul.mubr.f32.vlgmr.msra.gmra.mxu1 %v1158_v31  ;;  %2214 = vmatprep.subr.mxu1 %v2469_v3 }
 0x92d   :  { %2218 = vmatprep.mubr.msk.f32.mxu1 %vm2470_vm1, %v2469_v3  ;;  %2208 = vmatpush3.msra.mxu0 %v1263_v35 }
 0x92e   :  { %2209 = vmatprep.subr.mxu0 %v1262_v36 }
 0x92f   :  { %2210 = vmatpush3.msra.mxu0 %v1262_v36 }
 0x930   :  { %2256 = vmatprep.subr.mxu0 %v2469_v3 }
 0x9ec   :  { %v2178_v38 = vpop.f32.mrf.mxu1 }
 0x9ed   :  { %v1256_v39 = vadd.f32 %v2178_v38, %v1660_v37 }
 0x9ee   :  { %v1250_v40 = vpop.f32.mrf.mxu1 }
 0x9ef   :  { %v1251_v41 = vadd.f32 %v1660_v37, %v1250_v40  ;;  %v1260_v43 = vmax.f32 %v1256_v39, 0.0 }
 0x9f1   :  { %v1259_v42 = vmax.f32 %v1251_v41, 0.0 }
 0x9f3   :  { %2211 = vmatprep.mubr.f32.mxu0 %v1259_v42 }
 0x9f4   :  { %2212 = vmatmul.mubr.f32.vlgmr.msra.gmra.mxu0 %v1260_v43 }
 0x9f5   :  { %2288 = vmatprep.mubr.msk.f32.mxu0 %vm2470_vm1, %v2469_v3  ;;  %2257 = vmatpush3.msra.mxu0 %v1537_v0 }
 0x9f6   :  { %2258 = vmatprep.subr.mxu0 %v2469_v3 }
 0x9f7   :  { %2259 = vmatpush3.msra.mxu0 %v1536_v1 }
 0x9f8   :  { %2260 = vmatprep.subr.mxu0 %v2469_v3 }
 0x9f9   :  { %2261 = vmatpush3.msra.mxu0 %v1535_v2 }
 0x9fa   :  { %2262 = vmatprep.subr.mxu0 %v2469_v3 }
 0x9fb   :  { %2263 = vmatpush3.msra.mxu0 %v1534_v4 }
 0x9fc   :  { %2264 = vmatprep.subr.mxu0 %v2469_v3 }
 0x9fd   :  { %2265 = vmatpush3.msra.mxu0 %v1533_v5 }
 0x9fe   :  { %2266 = vmatprep.subr.mxu0 %v2469_v3 }
 0x9ff   :  { %2267 = vmatpush3.msra.mxu0 %v1532_v6 }
 0xa00   :  { %2268 = vmatprep.subr.mxu0 %v2469_v3 }
 0xa01   :  { %2269 = vmatpush3.msra.mxu0 %v1531_v7 }
 0xa02   :  { %2270 = vmatprep.subr.mxu0 %v2469_v3 }
 0xa03   :  { %2271 = vmatpush3.msra.mxu0 %v1530_v8 }
 0xa04   :  { %2272 = vmatprep.subr.mxu0 %v2469_v3 }
 0xa05   :  { %2273 = vmatpush3.msra.mxu0 %v1529_v9 }
 0xa06   :  { %2274 = vmatprep.subr.mxu0 %v2469_v3 }
 0xa07   :  { %2275 = vmatpush3.msra.mxu0 %v1528_v10 }
 0xa08   :  { %2276 = vmatprep.subr.mxu0 %v2469_v3 }
 0xa09   :  { %2277 = vmatpush3.msra.mxu0 %v1527_v11 }
 0xa0a   :  { %2278 = vmatprep.subr.mxu0 %v2469_v3 }
 0xa0b   :  { %2279 = vmatpush3.msra.mxu0 %v1526_v12 }
 0xa0c   :  { %2280 = vmatprep.subr.mxu0 %v2469_v3 }
 0xa0d   :  { %2281 = vmatpush3.msra.mxu0 %v1525_v13 }
 0xa0e   :  { %2282 = vmatprep.subr.mxu0 %v2469_v3 }
 0xa0f   :  { %2283 = vmatpush3.msra.mxu0 %v1524_v16 }
 0xa10   :  { %2284 = vmatprep.subr.mxu0 %v2469_v3 }
 0xa11   :  { %2285 = vmatpush3.msra.mxu0 %v1523_v17 }
 0xa12   :  { %2286 = vmatprep.subr.mxu0 %v2469_v3 }
 0xa13   :  { %2287 = vmatpush3.msra.mxu0 %v1522_v18 }
 0xab4   :  { %v2213_v45 = vpop.f32.mrf.mxu0 }
 0xab5   :  { %v1358_v47 = vadd.f32 %v2213_v45, %v1662_v44 }
 0xab6   :  { %v1352_v48 = vpop.f32.mrf.mxu0 }
 0xab7   :  { %v1362_v49 = vmax.f32 %v1358_v47, 0.0  ;;  %v1353_v50 = vadd.f32 %v1662_v44, %v1352_v48 }
 0xab9   :  { %v1361_v51 = vmax.f32 %v1353_v50, 0.0  ;;  %2215 = vmatpush3.msra.mxu1 %v1362_v49 }
 0xaba   :  { %2216 = vmatprep.subr.mxu1 %v2469_v3 }
 0xabb   :  { %2217 = vmatpush3.msra.mxu1 %v1361_v51 }
 0xabc   :  { %2219 = vmatmul.mubr.msk.f32.vlgmr.msra.gmra.mxu1 %vm210_vm3, %v2620_v27  ;;  %2221 = vmatprep.subr.mxu1 %v2469_v3  ;;  %v1444_v27 = vld [vmem:[#allocation11 + $0x1d0] sm:$0xff] }
 0xabd   :  { %2222 = vmatpush3.msra.mxu1 %v1449_v33  ;;  %2253 = vmatprep.mubr.msk.f32.mxu1 %vm2470_vm1, %v2469_v3 }
 0xabe   :  { %2223 = vmatprep.subr.mxu1 %v2469_v3 }
 0xabf   :  { %2224 = vmatpush3.msra.mxu1 %v1448_v52 }
 0xac0   :  { %2225 = vmatprep.subr.mxu1 %v2469_v3 }
 0xac1   :  { %2226 = vmatpush3.msra.mxu1 %v1447_v53 }
 0xac2   :  { %2227 = vmatprep.subr.mxu1 %v2469_v3 }
 0xac3   :  { %2228 = vmatpush3.msra.mxu1 %v1446_v54 }
 0xac4   :  { %2229 = vmatprep.subr.mxu1 %v2469_v3 }
 0xac5   :  { %2230 = vmatpush3.msra.mxu1 %v1445_v55 }
 0xac6   :  { %2231 = vmatprep.subr.mxu1 %v2469_v3 }
 0xac7   :  { %2232 = vmatpush3.msra.mxu1 %v1444_v27 }
 0xac8   :  { %2233 = vmatprep.subr.mxu1 %v2469_v3 }
 0xac9   :  { %2234 = vmatpush3.msra.mxu1 %v1443_v56 }
 0xaca   :  { %2235 = vmatprep.subr.mxu1 %v2469_v3 }
 0xacb   :  { %2236 = vmatpush3.msra.mxu1 %v1442_v57 }
 0xacc   :  { %2237 = vmatprep.subr.mxu1 %v2469_v3 }
 0xacd   :  { %2238 = vmatpush3.msra.mxu1 %v1441_v24 }
 0xace   :  { %2239 = vmatprep.subr.mxu1 %v2469_v3 }
 0xacf   :  { %2240 = vmatpush3.msra.mxu1 %v1440_v58 }
 0xad0   :  { %2241 = vmatprep.subr.mxu1 %v2469_v3 }
 0xad1   :  { %2242 = vmatpush3.msra.mxu1 %v1439_v59 }
 0xad2   :  { %2243 = vmatprep.subr.mxu1 %v2469_v3 }
 0xad3   :  { %2244 = vmatpush3.msra.mxu1 %v1438_v60 }
 0xad4   :  { %2245 = vmatprep.subr.mxu1 %v2469_v3 }
 0xad5   :  { %2246 = vmatpush3.msra.mxu1 %v1437_v61 }
 0xad6   :  { %2247 = vmatprep.subr.mxu1 %v2469_v3 }
 0xad7   :  { %2248 = vmatpush3.msra.mxu1 %v1436_v62 }
 0xad8   :  { %2249 = vmatprep.subr.mxu1 %v2469_v3 }
 0xad9   :  { %2250 = vmatpush3.msra.mxu1 %v1435_v63 }
 0xada   :  { %2251 = vmatprep.subr.mxu1 %v2469_v3 }
 0xadb   :  { %2252 = vmatpush3.msra.mxu1 %v1434_v46 }
 0xb7c   :  { %v1429_v14 = vpop.f32.mrf.mxu1 }
 0xb7d   :  { %2254 = vmatmul.mubr.f32.vlgmr.msra.gmra.mxu1 %v1429_v14 }
 0xb7e   :  { %v2220_v15 = vpop.f32.mrf.mxu1 }
 0xc3d   :  { %v1516_v19 = vpop.f32.mrf.mxu1 }
 0xc3e   :  { %v1520_v20 = vadd.f32 %v1516_v19, %v2699_v26 }
 0xc3f   :  { %v2255_v21 = vpop.f32.mrf.mxu1 }
 0xc40   :  { %v1521_v22 = vmax.f32 %v1520_v20, 0.0 }
 0xc42   :  { %2289 = vmatmul.mubr.f32.vlgmr.msra.gmra.mxu0 %v1521_v22 }
 0xd02   :  { %v1611_v25 = vpop.f32.mrf.mxu0 }
 0xd03   :  { %v1612_v28 = vadd.f32 %v1664_v23, %v1611_v25 }
 0xd04   :  { %v2290_v29 = vpop.f32.mrf.mxu0 }
 0xd05   :  { %1615 = vst [vmem:[%s2769_s14] sm:$0xff] %v1612_v28 }
 0xd06   :  { %1620 = vsyncpa [#allocation8], 1 }
 0xd07   :  { %1621 = vsyncpa [#allocation10], 1 }
 0xd08   :  { %1622 = vsyncpa [#allocation13], 1 }

</bundles_post_ra>
